<compile_context>
chip_gen: v7x
topology: tpu7x:2x2x1
jax: 0.10.0
libtpu: 0.0.40
codegen_flags: <defaults>
</compile_context>

<pallas_src>
import functools

import jax
import jax.numpy as jnp
from jax.experimental import pallas as pl
from jax.experimental.pallas import tpu as pltpu


# ----------------------------------------------------------------------------
# In-kernel helpers
# ----------------------------------------------------------------------------
def _rel_shift(bd):
    """Exact RelCrossMultiHeadAttn._rel_shift on a (H, Q, R) slab.

    Equivalent to: pad a zero column, flat-reinterpret (Q, R+1) as (R+1, Q),
    drop the first row, reinterpret back to (Q, R) — done per head.
    Implemented without reshapes: build a widened slab
        wide[h, i, :] = [bd[h, i, :], 0, bd[h, i+1, :]]
    and shift row i left by (Q-1-i) lanes using a binary decomposition of the
    shift amount (log2(Q) whole-slab conditional lane shifts), then keep the
    first R lanes.  Vectorized over heads and rows.  Valid for Q <= R + 1
    (always true here since rlen == klen >= qlen).
    """
    H, Q, R = bd.shape
    dt = bd.dtype
    if Q == 1:
        bd_up = jnp.zeros((H, 1, R), dt)
    else:
        bd_up = jnp.concatenate([bd[:, 1:, :], jnp.zeros((H, 1, R), dt)], axis=1)
    wide = jnp.concatenate([bd, jnp.zeros((H, Q, 1), dt), bd_up], axis=2)  # (H,Q,2R+1)
    w0 = 2 * R + 1

    # per-row left-shift amount: Q-1-i
    shift = (Q - 1) - jax.lax.broadcasted_iota(jnp.int32, (1, Q, w0), 1)

    cur = wide
    b, bit = 1, 0
    while b <= Q - 1:
        shifted = jnp.concatenate(
            [cur[:, :, b:], jnp.zeros((H, Q, b), dt)], axis=2)
        take = jnp.bitwise_and(jnp.right_shift(shift, bit), 1) == 1
        cur = jnp.where(take, shifted, cur)
        b *= 2
        bit += 1
    return cur[:, :, :R]


# ----------------------------------------------------------------------------
# The fused decoder-layer kernel (one grid step == one batch element)
# ----------------------------------------------------------------------------
def _decoder_layer_kernel(n_head, d_head, eps,
                          dec_ref, cross_ref, r_ref,
                          rwb_ref, rrb_ref,
                          wq_ref, wk_ref, wv_ref, wr_ref, wo_ref,
                          ln1g_ref, ln1b_ref,
                          w1_ref, b1_ref, w2_ref, b2_ref,
                          ln2g_ref, ln2b_ref,
                          out_ref):
    f32 = jnp.float32
    bf16 = jnp.bfloat16

    x = dec_ref[0]            # (Q, D)  decoder input for this batch element
    c = cross_ref[0]          # (K, D)  cross input
    r = r_ref[...]            # (R, D)  relative position embeddings
    H, dh = n_head, d_head
    scale = 1.0 / (dh ** 0.5)

    x16 = x.astype(bf16)
    c16 = c.astype(bf16)
    r16 = r.astype(bf16)

    # --- full-width projections (MXU, bf16 in / f32 accumulate) ---
    q_all = jnp.dot(x16, wq_ref[...], preferred_element_type=f32)    # (Q, H*dh)
    k_all = jnp.dot(c16, wk_ref[...], preferred_element_type=f32)    # (K, H*dh)
    v_all = jnp.dot(c16, wv_ref[...], preferred_element_type=f32)    # (K, H*dh)
    rk_all = jnp.dot(r16, wr_ref[...], preferred_element_type=f32)   # (R, H*dh)

    # --- hoisted bias adds + scale (scale commutes with AC/BD/rel_shift) ---
    q_rw = (q_all + rwb_ref[...]) * scale                            # (Q, H*dh)
    q_rr = (q_all + rrb_ref[...]) * scale                            # (Q, H*dh)

    def split_heads(t):       # (X, H*dh) f32 -> (H, X, dh) bf16
        return jnp.stack(
            [t[:, h * dh:(h + 1) * dh] for h in range(H)], axis=0).astype(bf16)

    qw_h = split_heads(q_rw)          # (H, Q, dh)
    qr_h = split_heads(q_rr)          # (H, Q, dh)
    k_h = split_heads(k_all)          # (H, K, dh)
    v_h = split_heads(v_all)          # (H, K, dh)
    r_h = split_heads(rk_all)         # (H, R, dh)

    # --- head-batched relative attention ---
    AC = jnp.einsum('hqd,hkd->hqk', qw_h, k_h,
                    preferred_element_type=f32)                      # (H, Q, K)
    BD = jnp.einsum('hqd,hrd->hqr', qr_h, r_h,
                    preferred_element_type=f32)                      # (H, Q, R)
    BD = _rel_shift(BD)                                              # (H, Q, R)

    score = AC + BD                                                  # already scaled
    m = jnp.max(score, axis=-1, keepdims=True)
    e = jnp.exp(score - m)
    denom = jnp.sum(e, axis=-1, keepdims=True)
    p = e * pl.reciprocal(denom, approx=True)                        # softmax over keys

    attn_vec = jnp.einsum('hqk,hkd->hqd', p.astype(bf16), v_h,
                          preferred_element_type=f32)                # (H, Q, dh)

    # merge heads back onto the lane axis and do ONE output matmul:
    # (Q, H*dh) @ (H*dh, D) — larger contraction dim, better MXU utilisation.
    attn_flat = jnp.concatenate([attn_vec[h] for h in range(H)],
                                axis=-1).astype(bf16)                # (Q, H*dh)
    attn_out = jnp.dot(attn_flat, wo_ref[...],
                       preferred_element_type=f32)                   # (Q, D)

    def layer_norm(v, g, b):
        mu = jnp.mean(v, axis=-1, keepdims=True)
        var = jnp.mean((v - mu) ** 2, axis=-1, keepdims=True)
        return (v - mu) * jax.lax.rsqrt(var + eps) * g + b

    # post-LayerNorm residual (pre_lnorm=False default)
    y = layer_norm(x + attn_out, ln1g_ref[...], ln1b_ref[...])       # (Q, D) f32

    # --- position-wise FFN (bf16 matmuls, f32 accumulate) ---
    h1 = jnp.maximum(
        jnp.dot(y.astype(bf16), w1_ref[...], preferred_element_type=f32)
        + b1_ref[...], 0.0)
    ff = jnp.dot(h1.astype(bf16), w2_ref[...], preferred_element_type=f32) \
        + b2_ref[...]
    out = layer_norm(y + ff, ln2g_ref[...], ln2b_ref[...])

    out_ref[0] = out.astype(out_ref.dtype)


# ----------------------------------------------------------------------------
# Wrapper
# ----------------------------------------------------------------------------
def rel_partial_learnable_cross_decoder_layer(dec_inp, cross_inp, r, params,
                                              n_head, d_head):
    """dec_inp: (qlen, bsz, d_model); cross_inp: (klen, bsz, d_model);
    r: (rlen, d_model) with rlen == klen (required by AC + BD)."""
    qlen, bsz, d_model = dec_inp.shape
    klen = cross_inp.shape[0]
    rlen = r.shape[0]
    assert rlen == klen, "relative-position length must match the key length"
    assert qlen <= rlen, "rel-shift expects qlen <= rlen (standard XL usage)"
    d_inner = params['W1'].shape[1]
    hd = n_head * d_head

    # batch-major layout for the kernel (PyTorch layout at the boundary).
    dec_b = jnp.transpose(dec_inp, (1, 0, 2))      # (B, Q, D)
    cross_b = jnp.transpose(cross_inp, (1, 0, 2))  # (B, K, D)

    # weights shipped to the kernel in bf16 (halves VMEM/HBM traffic);
    # biases / LayerNorm params stay f32.
    cdt = jnp.bfloat16
    wq = params['Wq'].astype(cdt)
    wk = params['Wkv'][:, :hd].astype(cdt)
    wv = params['Wkv'][:, hd:].astype(cdt)
    wr = params['Wr'].astype(cdt)
    wo = params['Wo'].astype(cdt)                  # (H*dh, D)
    w1 = params['W1'].astype(cdt)
    w2 = params['W2'].astype(cdt)
    rwb = params['r_w_bias'].reshape(1, hd).astype(jnp.float32)
    rrb = params['r_r_bias'].reshape(1, hd).astype(jnp.float32)

    kernel = functools.partial(_decoder_layer_kernel, n_head, d_head, 1e-5)

    def full(shape):
        return pl.BlockSpec(shape, lambda b: (0,) * len(shape))

    in_specs = [
        pl.BlockSpec((1, qlen, d_model), lambda b: (b, 0, 0)),   # dec
        pl.BlockSpec((1, klen, d_model), lambda b: (b, 0, 0)),   # cross
        full((rlen, d_model)),                                   # r
        full((1, hd)),                                           # r_w_bias (flat)
        full((1, hd)),                                           # r_r_bias (flat)
        full((d_model, hd)),                                     # Wq
        full((d_model, hd)),                                     # Wk
        full((d_model, hd)),                                     # Wv
        full((d_model, hd)),                                     # Wr
        full((hd, d_model)),                                     # Wo
        full((1, d_model)),                                      # ln1 gamma
        full((1, d_model)),                                      # ln1 beta
        full((d_model, d_inner)),                                # FF W1
        full((1, d_inner)),                                      # FF b1
        full((d_inner, d_model)),                                # FF W2
        full((1, d_model)),                                      # FF b2
        full((1, d_model)),                                      # ln2 gamma
        full((1, d_model)),                                      # ln2 beta
    ]
    out_spec = pl.BlockSpec((1, qlen, d_model), lambda b: (b, 0, 0))

    # One batch element per grid step: with the heads batched into full-width
    # matmuls the per-step body is already MXU-friendly, and the parallel
    # batch axis keeps both v7x TensorCores busy whenever bsz >= 2.  Constant
    # index_maps keep all weight tiles resident in VMEM across grid steps.
    out_b = pl.pallas_call(
        kernel,
        out_shape=jax.ShapeDtypeStruct((bsz, qlen, d_model), dec_inp.dtype),
        grid=(bsz,),
        in_specs=in_specs,
        out_specs=out_spec,
        compiler_params=pltpu.CompilerParams(dimension_semantics=("parallel",)),
    )(dec_b, cross_b, r,
      rwb, rrb,
      wq, wk, wv, wr, wo,
      params['ln1_g'], params['ln1_b'],
      w1, params['b1'], w2, params['b2'],
      params['ln2_g'], params['ln2_b'])

    return jnp.transpose(out_b, (1, 0, 2))         # back to (qlen, bsz, d_model)


# ----------------------------------------------------------------------------
# Deterministic parameter init (shapes from the module's __init__)
# ----------------------------------------------------------------------------
def init_params(key, n_head, d_model, d_head, d_inner):
    ks = jax.random.split(key, 12)
    s = 0.1
    hd = n_head * d_head
    return {
        'Wq':  s * jax.random.normal(ks[0], (d_model, hd), jnp.float32),
        'Wkv': s * jax.random.normal(ks[1], (d_model, 2 * hd), jnp.float32),
        'Wr':  s * jax.random.normal(ks[2], (d_model, hd), jnp.float32),
        'Wo':  s * jax.random.normal(ks[3], (hd, d_model), jnp.float32),
        'r_w_bias': s * jax.random.normal(ks[4], (n_head, d_head), jnp.float32),
        'r_r_bias': s * jax.random.normal(ks[5], (n_head, d_head), jnp.float32),
        'ln1_g': 1.0 + 0.05 * jax.random.normal(ks[6], (1, d_model), jnp.float32),
        'ln1_b': 0.05 * jax.random.normal(ks[7], (1, d_model), jnp.float32),
        'W1': s * jax.random.normal(ks[8], (d_model, d_inner), jnp.float32),
        'b1': 0.05 * jax.random.normal(ks[9], (1, d_inner), jnp.float32),
        'W2': s * jax.random.normal(ks[10], (d_inner, d_model), jnp.float32),
        'b2': 0.05 * jax.random.normal(ks[11], (1, d_model), jnp.float32),
        'ln2_g': jnp.ones((1, d_model), jnp.float32),
        'ln2_b': jnp.zeros((1, d_model), jnp.float32),
    }


# ----------------------------------------------------------------------------
# Pure-JAX reference (mirrors the PyTorch forward in f32, for validation)
# ----------------------------------------------------------------------------
def _rel_shift_ref(x):
    q, r = x.shape[0], x.shape[1]
    zp = jnp.zeros((q, 1) + x.shape[2:], x.dtype)
    xp = jnp.concatenate([zp, x], axis=1)
    xp = xp.reshape((r + 1, q) + x.shape[2:])
    return xp[1:].reshape(x.shape)


def _layer_norm_ref(v, g, b, eps=1e-5):
    mu = jnp.mean(v, axis=-1, keepdims=True)
    var = jnp.mean((v - mu) ** 2, axis=-1, keepdims=True)
    return (v - mu) / jnp.sqrt(var + eps) * g + b


def reference(dec, cross, r, p, n_head, d_head):
    qlen, bsz, _ = dec.shape
    scale = 1.0 / d_head ** 0.5
    q_all = dec @ p['Wq']
    kv = cross @ p['Wkv']
    k_all, v_all = jnp.split(kv, 2, axis=-1)
    rk = r @ p['Wr']
    qh = q_all.reshape(qlen, bsz, n_head, d_head)
    kh = k_all.reshape(-1, bsz, n_head, d_head)
    vh = v_all.reshape(-1, bsz, n_head, d_head)
    rh = rk.reshape(-1, n_head, d_head)
    AC = jnp.einsum('ibnd,jbnd->ijbn', qh + p['r_w_bias'], kh)
    BD = _rel_shift_ref(jnp.einsum('ibnd,jnd->ijbn', qh + p['r_r_bias'], rh))
    prob = jax.nn.softmax((AC + BD) * scale, axis=1)
    vec = jnp.einsum('ijbn,jbnd->ibnd', prob, vh).reshape(qlen, bsz, n_head * d_head)
    attn_out = vec @ p['Wo']
    y = _layer_norm_ref(dec + attn_out, p['ln1_g'], p['ln1_b'])
    h1 = jax.nn.relu(y @ p['W1'] + p['b1'])
    ff = h1 @ p['W2'] + p['b2']
    return _layer_norm_ref(y + ff, p['ln2_g'], p['ln2_b'])


if __name__ == "__main__":
    n_head, d_model, d_head, d_inner = 2, 32, 16, 64

    key = jax.random.PRNGKey(0)
    kp, kdata = jax.random.split(key)
    params = init_params(kp, n_head, d_model, d_head, d_inner)

    # config 1: klen == qlen (mems=None, same-length cross);
    # config 2: klen > qlen (exercises the generalized rel-shift / cross length)
    for (qlen, klen, bsz) in [(8, 8, 2), (8, 16, 2)]:
        rlen = klen
        k1, k2, k3, kdata = jax.random.split(kdata, 4)
        dec = jax.random.normal(k1, (qlen, bsz, d_model), jnp.float32)
        cross = jax.random.normal(k2, (klen, bsz, d_model), jnp.float32)
        r = jax.random.normal(k3, (rlen, d_model), jnp.float32)

        out = rel_partial_learnable_cross_decoder_layer(dec, cross, r, params,
                                                        n_head, d_head)
        out = jax.block_until_ready(out)
        assert out.shape == (qlen, bsz, d_model)

        ref = reference(dec, cross, r, params, n_head, d_head)
        max_err = float(jnp.max(jnp.abs(out - ref)))
        # bf16 matmul operands with f32 accumulation vs f32 reference
        assert jnp.allclose(out, ref, atol=5e-2, rtol=5e-2), max_err

    print("KERNEL_OK")
</pallas_src>

<mosaic_0001>
module attributes {stable_mosaic.version = 11 : i64} {
  func.func @_decoder_layer_kernel(%arg0: i32, %arg1: memref<1x8x32xf32, #tpu.memory_space<vmem>>, %arg2: memref<1x8x32xf32, #tpu.memory_space<vmem>>, %arg3: memref<8x32xf32, #tpu.memory_space<vmem>>, %arg4: memref<1x32xf32, #tpu.memory_space<vmem>>, %arg5: memref<1x32xf32, #tpu.memory_space<vmem>>, %arg6: memref<32x32xbf16, #tpu.memory_space<vmem>>, %arg7: memref<32x32xbf16, #tpu.memory_space<vmem>>, %arg8: memref<32x32xbf16, #tpu.memory_space<vmem>>, %arg9: memref<32x32xbf16, #tpu.memory_space<vmem>>, %arg10: memref<32x32xbf16, #tpu.memory_space<vmem>>, %arg11: memref<1x32xf32, #tpu.memory_space<vmem>>, %arg12: memref<1x32xf32, #tpu.memory_space<vmem>>, %arg13: memref<32x64xbf16, #tpu.memory_space<vmem>>, %arg14: memref<1x64xf32, #tpu.memory_space<vmem>>, %arg15: memref<64x32xbf16, #tpu.memory_space<vmem>>, %arg16: memref<1x32xf32, #tpu.memory_space<vmem>>, %arg17: memref<1x32xf32, #tpu.memory_space<vmem>>, %arg18: memref<1x32xf32, #tpu.memory_space<vmem>>, %arg19: memref<1x8x32xf32, #tpu.memory_space<vmem>>) attributes {dimension_semantics = [#tpu.dimension_semantics<parallel>], iteration_bounds = array<i64: 2>, scalar_prefetch = 0 : i64, scratch_operands = 0 : i64, tpu.core_type = #tpu.core_type<tc>, window_params = [{transform_indices = @transform_0, window_bounds = array<i64: 1, 8, 32>}, {transform_indices = @transform_1, window_bounds = array<i64: 1, 8, 32>}, {pipeline_mode = #tpu.pipeline_mode<synchronous>, transform_indices = @transform_2, window_bounds = array<i64: 8, 32>}, {pipeline_mode = #tpu.pipeline_mode<synchronous>, transform_indices = @transform_3, window_bounds = array<i64: 1, 32>}, {pipeline_mode = #tpu.pipeline_mode<synchronous>, transform_indices = @transform_4, window_bounds = array<i64: 1, 32>}, {pipeline_mode = #tpu.pipeline_mode<synchronous>, transform_indices = @transform_5, window_bounds = array<i64: 32, 32>}, {pipeline_mode = #tpu.pipeline_mode<synchronous>, transform_indices = @transform_6, window_bounds = array<i64: 32, 32>}, {pipeline_mode = #tpu.pipeline_mode<synchronous>, transform_indices = @transform_7, window_bounds = array<i64: 32, 32>}, {pipeline_mode = #tpu.pipeline_mode<synchronous>, transform_indices = @transform_8, window_bounds = array<i64: 32, 32>}, {pipeline_mode = #tpu.pipeline_mode<synchronous>, transform_indices = @transform_9, window_bounds = array<i64: 32, 32>}, {pipeline_mode = #tpu.pipeline_mode<synchronous>, transform_indices = @transform_10, window_bounds = array<i64: 1, 32>}, {pipeline_mode = #tpu.pipeline_mode<synchronous>, transform_indices = @transform_11, window_bounds = array<i64: 1, 32>}, {pipeline_mode = #tpu.pipeline_mode<synchronous>, transform_indices = @transform_12, window_bounds = array<i64: 32, 64>}, {pipeline_mode = #tpu.pipeline_mode<synchronous>, transform_indices = @transform_13, window_bounds = array<i64: 1, 64>}, {pipeline_mode = #tpu.pipeline_mode<synchronous>, transform_indices = @transform_14, window_bounds = array<i64: 64, 32>}, {pipeline_mode = #tpu.pipeline_mode<synchronous>, transform_indices = @transform_15, window_bounds = array<i64: 1, 32>}, {pipeline_mode = #tpu.pipeline_mode<synchronous>, transform_indices = @transform_16, window_bounds = array<i64: 1, 32>}, {pipeline_mode = #tpu.pipeline_mode<synchronous>, transform_indices = @transform_17, window_bounds = array<i64: 1, 32>}, {transform_indices = @transform_18, window_bounds = array<i64: 1, 8, 32>}]} {
    %c0 = arith.constant 0 : index
    %c0_0 = arith.constant 0 : index
    %c0_1 = arith.constant 0 : index
    %0 = vector.load %arg1[%c0, %c0_0, %c0_1] : memref<1x8x32xf32, #tpu.memory_space<vmem>>, vector<1x8x32xf32>
    %1 = vector.shape_cast %0 : vector<1x8x32xf32> to vector<8x32xf32>
    %c0_2 = arith.constant 0 : index
    %c0_3 = arith.constant 0 : index
    %c0_4 = arith.constant 0 : index
    %2 = vector.load %arg2[%c0_2, %c0_3, %c0_4] : memref<1x8x32xf32, #tpu.memory_space<vmem>>, vector<1x8x32xf32>
    %3 = vector.shape_cast %2 : vector<1x8x32xf32> to vector<8x32xf32>
    %c0_5 = arith.constant 0 : index
    %c0_6 = arith.constant 0 : index
    %4 = vector.load %arg3[%c0_5, %c0_6] : memref<8x32xf32, #tpu.memory_space<vmem>>, vector<8x32xf32>
    %5 = arith.truncf %1 : vector<8x32xf32> to vector<8x32xbf16>
    %6 = arith.truncf %3 : vector<8x32xf32> to vector<8x32xbf16>
    %7 = arith.truncf %4 : vector<8x32xf32> to vector<8x32xbf16>
    %c0_7 = arith.constant 0 : index
    %c0_8 = arith.constant 0 : index
    %8 = vector.load %arg6[%c0_7, %c0_8] : memref<32x32xbf16, #tpu.memory_space<vmem>>, vector<32x32xbf16>
    %cst = arith.constant dense<0.000000e+00> : vector<8x32xf32>
    %9 = tpu.matmul %5, %8, %cst {dimension_numbers = #tpu.dot_dimension_numbers<[1], [0], [0], [1], [0, 0, 1, 1], [], []>} : vector<8x32xbf16>, vector<32x32xbf16>, vector<8x32xf32> -> vector<8x32xf32>
    %c0_9 = arith.constant 0 : index
    %c0_10 = arith.constant 0 : index
    %10 = vector.load %arg7[%c0_9, %c0_10] : memref<32x32xbf16, #tpu.memory_space<vmem>>, vector<32x32xbf16>
    %cst_11 = arith.constant dense<0.000000e+00> : vector<8x32xf32>
    %11 = tpu.matmul %6, %10, %cst_11 {dimension_numbers = #tpu.dot_dimension_numbers<[1], [0], [0], [1], [0, 0, 1, 1], [], []>} : vector<8x32xbf16>, vector<32x32xbf16>, vector<8x32xf32> -> vector<8x32xf32>
    %c0_12 = arith.constant 0 : index
    %c0_13 = arith.constant 0 : index
    %12 = vector.load %arg8[%c0_12, %c0_13] : memref<32x32xbf16, #tpu.memory_space<vmem>>, vector<32x32xbf16>
    %cst_14 = arith.constant dense<0.000000e+00> : vector<8x32xf32>
    %13 = tpu.matmul %6, %12, %cst_14 {dimension_numbers = #tpu.dot_dimension_numbers<[1], [0], [0], [1], [0, 0, 1, 1], [], []>} : vector<8x32xbf16>, vector<32x32xbf16>, vector<8x32xf32> -> vector<8x32xf32>
    %c0_15 = arith.constant 0 : index
    %c0_16 = arith.constant 0 : index
    %14 = vector.load %arg9[%c0_15, %c0_16] : memref<32x32xbf16, #tpu.memory_space<vmem>>, vector<32x32xbf16>
    %cst_17 = arith.constant dense<0.000000e+00> : vector<8x32xf32>
    %15 = tpu.matmul %7, %14, %cst_17 {dimension_numbers = #tpu.dot_dimension_numbers<[1], [0], [0], [1], [0, 0, 1, 1], [], []>} : vector<8x32xbf16>, vector<32x32xbf16>, vector<8x32xf32> -> vector<8x32xf32>
    %c0_18 = arith.constant 0 : index
    %c0_19 = arith.constant 0 : index
    %16 = vector.load %arg4[%c0_18, %c0_19] : memref<1x32xf32, #tpu.memory_space<vmem>>, vector<1x32xf32>
    %17 = vector.broadcast %16 : vector<1x32xf32> to vector<8x32xf32>
    %18 = arith.addf %9, %17 : vector<8x32xf32>
    %cst_20 = arith.constant 2.500000e-01 : f32
    %19 = vector.broadcast %cst_20 : f32 to vector<8x32xf32>
    %20 = arith.mulf %18, %19 : vector<8x32xf32>
    %c0_21 = arith.constant 0 : index
    %c0_22 = arith.constant 0 : index
    %21 = vector.load %arg5[%c0_21, %c0_22] : memref<1x32xf32, #tpu.memory_space<vmem>>, vector<1x32xf32>
    %22 = vector.broadcast %21 : vector<1x32xf32> to vector<8x32xf32>
    %23 = arith.addf %9, %22 : vector<8x32xf32>
    %cst_23 = arith.constant 2.500000e-01 : f32
    %24 = vector.broadcast %cst_23 : f32 to vector<8x32xf32>
    %25 = arith.mulf %23, %24 : vector<8x32xf32>
    %26 = vector.extract_strided_slice %20 {offsets = [0, 0], sizes = [8, 16], strides = [1, 1]} : vector<8x32xf32> to vector<8x16xf32>
    %27 = vector.extract_strided_slice %20 {offsets = [0, 16], sizes = [8, 16], strides = [1, 1]} : vector<8x32xf32> to vector<8x16xf32>
    %28 = vector.shape_cast %26 : vector<8x16xf32> to vector<1x8x16xf32>
    %29 = vector.shape_cast %27 : vector<8x16xf32> to vector<1x8x16xf32>
    %30 = tpu.concatenate %28, %29 in 0 : vector<1x8x16xf32>, vector<1x8x16xf32> -> vector<2x8x16xf32>
    %31 = arith.truncf %30 : vector<2x8x16xf32> to vector<2x8x16xbf16>
    %32 = vector.extract_strided_slice %25 {offsets = [0, 0], sizes = [8, 16], strides = [1, 1]} : vector<8x32xf32> to vector<8x16xf32>
    %33 = vector.extract_strided_slice %25 {offsets = [0, 16], sizes = [8, 16], strides = [1, 1]} : vector<8x32xf32> to vector<8x16xf32>
    %34 = vector.shape_cast %32 : vector<8x16xf32> to vector<1x8x16xf32>
    %35 = vector.shape_cast %33 : vector<8x16xf32> to vector<1x8x16xf32>
    %36 = tpu.concatenate %34, %35 in 0 : vector<1x8x16xf32>, vector<1x8x16xf32> -> vector<2x8x16xf32>
    %37 = arith.truncf %36 : vector<2x8x16xf32> to vector<2x8x16xbf16>
    %38 = vector.extract_strided_slice %11 {offsets = [0, 0], sizes = [8, 16], strides = [1, 1]} : vector<8x32xf32> to vector<8x16xf32>
    %39 = vector.extract_strided_slice %11 {offsets = [0, 16], sizes = [8, 16], strides = [1, 1]} : vector<8x32xf32> to vector<8x16xf32>
    %40 = vector.shape_cast %38 : vector<8x16xf32> to vector<1x8x16xf32>
    %41 = vector.shape_cast %39 : vector<8x16xf32> to vector<1x8x16xf32>
    %42 = tpu.concatenate %40, %41 in 0 : vector<1x8x16xf32>, vector<1x8x16xf32> -> vector<2x8x16xf32>
    %43 = arith.truncf %42 : vector<2x8x16xf32> to vector<2x8x16xbf16>
    %44 = vector.extract_strided_slice %13 {offsets = [0, 0], sizes = [8, 16], strides = [1, 1]} : vector<8x32xf32> to vector<8x16xf32>
    %45 = vector.extract_strided_slice %13 {offsets = [0, 16], sizes = [8, 16], strides = [1, 1]} : vector<8x32xf32> to vector<8x16xf32>
    %46 = vector.shape_cast %44 : vector<8x16xf32> to vector<1x8x16xf32>
    %47 = vector.shape_cast %45 : vector<8x16xf32> to vector<1x8x16xf32>
    %48 = tpu.concatenate %46, %47 in 0 : vector<1x8x16xf32>, vector<1x8x16xf32> -> vector<2x8x16xf32>
    %49 = arith.truncf %48 : vector<2x8x16xf32> to vector<2x8x16xbf16>
    %50 = vector.extract_strided_slice %15 {offsets = [0, 0], sizes = [8, 16], strides = [1, 1]} : vector<8x32xf32> to vector<8x16xf32>
    %51 = vector.extract_strided_slice %15 {offsets = [0, 16], sizes = [8, 16], strides = [1, 1]} : vector<8x32xf32> to vector<8x16xf32>
    %52 = vector.shape_cast %50 : vector<8x16xf32> to vector<1x8x16xf32>
    %53 = vector.shape_cast %51 : vector<8x16xf32> to vector<1x8x16xf32>
    %54 = tpu.concatenate %52, %53 in 0 : vector<1x8x16xf32>, vector<1x8x16xf32> -> vector<2x8x16xf32>
    %55 = arith.truncf %54 : vector<2x8x16xf32> to vector<2x8x16xbf16>
    "tpu.trace_start"() <{level = 10 : i32, message = "hqd,hkd->hqk"}> : () -> ()
    %cst_24 = arith.constant dense<0.000000e+00> : vector<2x8x8xf32>
    %56 = tpu.matmul %31, %43, %cst_24 {dimension_numbers = #tpu.dot_dimension_numbers<[2], [2], [1], [1], [0, 0, 0, 1, 1, 1], [0], [0]>} : vector<2x8x16xbf16>, vector<2x8x16xbf16>, vector<2x8x8xf32> -> vector<2x8x8xf32>
    "tpu.trace_stop"() : () -> ()
    "tpu.trace_start"() <{level = 10 : i32, message = "hqd,hrd->hqr"}> : () -> ()
    %cst_25 = arith.constant dense<0.000000e+00> : vector<2x8x8xf32>
    %57 = tpu.matmul %37, %55, %cst_25 {dimension_numbers = #tpu.dot_dimension_numbers<[2], [2], [1], [1], [0, 0, 0, 1, 1, 1], [0], [0]>} : vector<2x8x16xbf16>, vector<2x8x16xbf16>, vector<2x8x8xf32> -> vector<2x8x8xf32>
    "tpu.trace_stop"() : () -> ()
    %58 = vector.extract_strided_slice %57 {offsets = [0, 1, 0], sizes = [2, 7, 8], strides = [1, 1, 1]} : vector<2x8x8xf32> to vector<2x7x8xf32>
    %cst_26 = arith.constant 0.000000e+00 : f32
    %59 = vector.broadcast %cst_26 : f32 to vector<2x1x8xf32>
    %60 = tpu.concatenate %58, %59 in 1 : vector<2x7x8xf32>, vector<2x1x8xf32> -> vector<2x8x8xf32>
    %cst_27 = arith.constant 0.000000e+00 : f32
    %61 = vector.broadcast %cst_27 : f32 to vector<2x8x1xf32>
    %62 = tpu.concatenate %57, %61, %60 in 2 : vector<2x8x8xf32>, vector<2x8x1xf32>, vector<2x8x8xf32> -> vector<2x8x17xf32>
    %63 = tpu.iota {dimensions = array<i32: 1>} : vector<1x8x17xi32>
    %c7_i32 = arith.constant 7 : i32
    %64 = vector.broadcast %c7_i32 : i32 to vector<1x8x17xi32>
    %65 = arith.subi %64, %63 : vector<1x8x17xi32>
    %66 = vector.extract_strided_slice %62 {offsets = [0, 0, 1], sizes = [2, 8, 16], strides = [1, 1, 1]} : vector<2x8x17xf32> to vector<2x8x16xf32>
    %cst_28 = arith.constant 0.000000e+00 : f32
    %67 = vector.broadcast %cst_28 : f32 to vector<2x8x1xf32>
    %68 = tpu.concatenate %66, %67 in 2 : vector<2x8x16xf32>, vector<2x8x1xf32> -> vector<2x8x17xf32>
    %c0_i32 = arith.constant 0 : i32
    %69 = vector.broadcast %c0_i32 : i32 to vector<1x8x17xi32>
    %70 = arith.shrsi %65, %69 : vector<1x8x17xi32>
    %c1_i32 = arith.constant 1 : i32
    %71 = vector.broadcast %c1_i32 : i32 to vector<1x8x17xi32>
    %72 = arith.andi %70, %71 : vector<1x8x17xi32>
    %c1_i32_29 = arith.constant 1 : i32
    %73 = vector.broadcast %c1_i32_29 : i32 to vector<1x8x17xi32>
    %74 = arith.cmpi eq, %72, %73 : vector<1x8x17xi32>
    %75 = vector.shape_cast %74 : vector<1x8x17xi1> to vector<1x8x17xi1>
    %76 = vector.broadcast %75 : vector<1x8x17xi1> to vector<2x8x17xi1>
    %77 = arith.select %76, %68, %62 : vector<2x8x17xi1>, vector<2x8x17xf32>
    %78 = vector.extract_strided_slice %77 {offsets = [0, 0, 2], sizes = [2, 8, 15], strides = [1, 1, 1]} : vector<2x8x17xf32> to vector<2x8x15xf32>
    %cst_30 = arith.constant 0.000000e+00 : f32
    %79 = vector.broadcast %cst_30 : f32 to vector<2x8x2xf32>
    %80 = tpu.concatenate %78, %79 in 2 : vector<2x8x15xf32>, vector<2x8x2xf32> -> vector<2x8x17xf32>
    %c1_i32_31 = arith.constant 1 : i32
    %81 = vector.broadcast %c1_i32_31 : i32 to vector<1x8x17xi32>
    %82 = arith.shrsi %65, %81 : vector<1x8x17xi32>
    %c1_i32_32 = arith.constant 1 : i32
    %83 = vector.broadcast %c1_i32_32 : i32 to vector<1x8x17xi32>
    %84 = arith.andi %82, %83 : vector<1x8x17xi32>
    %c1_i32_33 = arith.constant 1 : i32
    %85 = vector.broadcast %c1_i32_33 : i32 to vector<1x8x17xi32>
    %86 = arith.cmpi eq, %84, %85 : vector<1x8x17xi32>
    %87 = vector.shape_cast %86 : vector<1x8x17xi1> to vector<1x8x17xi1>
    %88 = vector.broadcast %87 : vector<1x8x17xi1> to vector<2x8x17xi1>
    %89 = arith.select %88, %80, %77 : vector<2x8x17xi1>, vector<2x8x17xf32>
    %90 = vector.extract_strided_slice %89 {offsets = [0, 0, 4], sizes = [2, 8, 13], strides = [1, 1, 1]} : vector<2x8x17xf32> to vector<2x8x13xf32>
    %cst_34 = arith.constant 0.000000e+00 : f32
    %91 = vector.broadcast %cst_34 : f32 to vector<2x8x4xf32>
    %92 = tpu.concatenate %90, %91 in 2 : vector<2x8x13xf32>, vector<2x8x4xf32> -> vector<2x8x17xf32>
    %c2_i32 = arith.constant 2 : i32
    %93 = vector.broadcast %c2_i32 : i32 to vector<1x8x17xi32>
    %94 = arith.shrsi %65, %93 : vector<1x8x17xi32>
    %c1_i32_35 = arith.constant 1 : i32
    %95 = vector.broadcast %c1_i32_35 : i32 to vector<1x8x17xi32>
    %96 = arith.andi %94, %95 : vector<1x8x17xi32>
    %c1_i32_36 = arith.constant 1 : i32
    %97 = vector.broadcast %c1_i32_36 : i32 to vector<1x8x17xi32>
    %98 = arith.cmpi eq, %96, %97 : vector<1x8x17xi32>
    %99 = vector.shape_cast %98 : vector<1x8x17xi1> to vector<1x8x17xi1>
    %100 = vector.broadcast %99 : vector<1x8x17xi1> to vector<2x8x17xi1>
    %101 = arith.select %100, %92, %89 : vector<2x8x17xi1>, vector<2x8x17xf32>
    %102 = vector.extract_strided_slice %101 {offsets = [0, 0, 0], sizes = [2, 8, 8], strides = [1, 1, 1]} : vector<2x8x17xf32> to vector<2x8x8xf32>
    %103 = arith.addf %56, %102 : vector<2x8x8xf32>
    %cst_37 = arith.constant dense<0xFF800000> : vector<2x8xf32>
    %104 = vector.multi_reduction <maximumf>, %103, %cst_37 [2] : vector<2x8x8xf32> to vector<2x8xf32>
    %105 = vector.shape_cast %104 : vector<2x8xf32> to vector<2x8x1xf32>
    %106 = vector.broadcast %105 : vector<2x8x1xf32> to vector<2x8x8xf32>
    %107 = arith.subf %103, %106 : vector<2x8x8xf32>
    %108 = math.exp %107 : vector<2x8x8xf32>
    %cst_38 = arith.constant dense<0.000000e+00> : vector<2x8xf32>
    %109 = vector.multi_reduction <add>, %108, %cst_38 [2] : vector<2x8x8xf32> to vector<2x8xf32>
    %110 = vector.shape_cast %109 : vector<2x8xf32> to vector<2x8x1xf32>
    %111 = tpu.reciprocal %110 {approx = true} : vector<2x8x1xf32> -> vector<2x8x1xf32>
    %112 = vector.broadcast %111 : vector<2x8x1xf32> to vector<2x8x8xf32>
    %113 = arith.mulf %108, %112 : vector<2x8x8xf32>
    %114 = arith.truncf %113 : vector<2x8x8xf32> to vector<2x8x8xbf16>
    "tpu.trace_start"() <{level = 10 : i32, message = "hqk,hkd->hqd"}> : () -> ()
    %cst_39 = arith.constant dense<0.000000e+00> : vector<2x8x16xf32>
    %115 = tpu.matmul %114, %49, %cst_39 {dimension_numbers = #tpu.dot_dimension_numbers<[2], [1], [1], [2], [0, 0, 0, 1, 1, 2], [0], [0]>} : vector<2x8x8xbf16>, vector<2x8x16xbf16>, vector<2x8x16xf32> -> vector<2x8x16xf32>
    "tpu.trace_stop"() : () -> ()
    %116 = vector.extract_strided_slice %115 {offsets = [0, 0, 0], sizes = [1, 8, 16], strides = [1, 1, 1]} : vector<2x8x16xf32> to vector<1x8x16xf32>
    %117 = vector.shape_cast %116 : vector<1x8x16xf32> to vector<8x16xf32>
    %118 = vector.extract_strided_slice %115 {offsets = [1, 0, 0], sizes = [1, 8, 16], strides = [1, 1, 1]} : vector<2x8x16xf32> to vector<1x8x16xf32>
    %119 = vector.shape_cast %118 : vector<1x8x16xf32> to vector<8x16xf32>
    %120 = tpu.concatenate %117, %119 in 1 : vector<8x16xf32>, vector<8x16xf32> -> vector<8x32xf32>
    %121 = arith.truncf %120 : vector<8x32xf32> to vector<8x32xbf16>
    %c0_40 = arith.constant 0 : index
    %c0_41 = arith.constant 0 : index
    %122 = vector.load %arg10[%c0_40, %c0_41] : memref<32x32xbf16, #tpu.memory_space<vmem>>, vector<32x32xbf16>
    %cst_42 = arith.constant dense<0.000000e+00> : vector<8x32xf32>
    %123 = tpu.matmul %121, %122, %cst_42 {dimension_numbers = #tpu.dot_dimension_numbers<[1], [0], [0], [1], [0, 0, 1, 1], [], []>} : vector<8x32xbf16>, vector<32x32xbf16>, vector<8x32xf32> -> vector<8x32xf32>
    %124 = arith.addf %1, %123 : vector<8x32xf32>
    %c0_43 = arith.constant 0 : index
    %c0_44 = arith.constant 0 : index
    %125 = vector.load %arg11[%c0_43, %c0_44] : memref<1x32xf32, #tpu.memory_space<vmem>>, vector<1x32xf32>
    %c0_45 = arith.constant 0 : index
    %c0_46 = arith.constant 0 : index
    %126 = vector.load %arg12[%c0_45, %c0_46] : memref<1x32xf32, #tpu.memory_space<vmem>>, vector<1x32xf32>
    %cst_47 = arith.constant dense<0.000000e+00> : vector<8xf32>
    %127 = vector.multi_reduction <add>, %124, %cst_47 [1] : vector<8x32xf32> to vector<8xf32>
    %128 = vector.shape_cast %127 : vector<8xf32> to vector<8x1xf32>
    %cst_48 = arith.constant 3.200000e+01 : f32
    %129 = vector.broadcast %cst_48 : f32 to vector<8x1xf32>
    %130 = arith.divf %128, %129 : vector<8x1xf32>
    %131 = vector.broadcast %130 : vector<8x1xf32> to vector<8x32xf32>
    %132 = arith.subf %124, %131 : vector<8x32xf32>
    %133 = arith.mulf %132, %132 : vector<8x32xf32>
    %cst_49 = arith.constant dense<0.000000e+00> : vector<8xf32>
    %134 = vector.multi_reduction <add>, %133, %cst_49 [1] : vector<8x32xf32> to vector<8xf32>
    %135 = vector.shape_cast %134 : vector<8xf32> to vector<8x1xf32>
    %cst_50 = arith.constant 3.200000e+01 : f32
    %136 = vector.broadcast %cst_50 : f32 to vector<8x1xf32>
    %137 = arith.divf %135, %136 : vector<8x1xf32>
    %138 = vector.broadcast %130 : vector<8x1xf32> to vector<8x32xf32>
    %139 = arith.subf %124, %138 : vector<8x32xf32>
    %cst_51 = arith.constant 9.99999974E-6 : f32
    %140 = vector.broadcast %cst_51 : f32 to vector<8x1xf32>
    %141 = arith.addf %137, %140 : vector<8x1xf32>
    %142 = math.rsqrt %141 : vector<8x1xf32>
    %143 = vector.broadcast %142 : vector<8x1xf32> to vector<8x32xf32>
    %144 = arith.mulf %139, %143 : vector<8x32xf32>
    %145 = vector.broadcast %125 : vector<1x32xf32> to vector<8x32xf32>
    %146 = arith.mulf %144, %145 : vector<8x32xf32>
    %147 = vector.broadcast %126 : vector<1x32xf32> to vector<8x32xf32>
    %148 = arith.addf %146, %147 : vector<8x32xf32>
    %149 = arith.truncf %148 : vector<8x32xf32> to vector<8x32xbf16>
    %c0_52 = arith.constant 0 : index
    %c0_53 = arith.constant 0 : index
    %150 = vector.load %arg13[%c0_52, %c0_53] : memref<32x64xbf16, #tpu.memory_space<vmem>>, vector<32x64xbf16>
    %cst_54 = arith.constant dense<0.000000e+00> : vector<8x64xf32>
    %151 = tpu.matmul %149, %150, %cst_54 {dimension_numbers = #tpu.dot_dimension_numbers<[1], [0], [0], [1], [0, 0, 1, 1], [], []>} : vector<8x32xbf16>, vector<32x64xbf16>, vector<8x64xf32> -> vector<8x64xf32>
    %c0_55 = arith.constant 0 : index
    %c0_56 = arith.constant 0 : index
    %152 = vector.load %arg14[%c0_55, %c0_56] : memref<1x64xf32, #tpu.memory_space<vmem>>, vector<1x64xf32>
    %153 = vector.broadcast %152 : vector<1x64xf32> to vector<8x64xf32>
    %154 = arith.addf %151, %153 : vector<8x64xf32>
    %cst_57 = arith.constant 0.000000e+00 : f32
    %155 = vector.broadcast %cst_57 : f32 to vector<8x64xf32>
    %156 = arith.maximumf %154, %155 : vector<8x64xf32>
    %157 = arith.truncf %156 : vector<8x64xf32> to vector<8x64xbf16>
    %c0_58 = arith.constant 0 : index
    %c0_59 = arith.constant 0 : index
    %158 = vector.load %arg15[%c0_58, %c0_59] : memref<64x32xbf16, #tpu.memory_space<vmem>>, vector<64x32xbf16>
    %cst_60 = arith.constant dense<0.000000e+00> : vector<8x32xf32>
    %159 = tpu.matmul %157, %158, %cst_60 {dimension_numbers = #tpu.dot_dimension_numbers<[1], [0], [0], [1], [0, 0, 1, 1], [], []>} : vector<8x64xbf16>, vector<64x32xbf16>, vector<8x32xf32> -> vector<8x32xf32>
    %c0_61 = arith.constant 0 : index
    %c0_62 = arith.constant 0 : index
    %160 = vector.load %arg16[%c0_61, %c0_62] : memref<1x32xf32, #tpu.memory_space<vmem>>, vector<1x32xf32>
    %161 = vector.broadcast %160 : vector<1x32xf32> to vector<8x32xf32>
    %162 = arith.addf %159, %161 : vector<8x32xf32>
    %163 = arith.addf %148, %162 : vector<8x32xf32>
    %c0_63 = arith.constant 0 : index
    %c0_64 = arith.constant 0 : index
    %164 = vector.load %arg17[%c0_63, %c0_64] : memref<1x32xf32, #tpu.memory_space<vmem>>, vector<1x32xf32>
    %c0_65 = arith.constant 0 : index
    %c0_66 = arith.constant 0 : index
    %165 = vector.load %arg18[%c0_65, %c0_66] : memref<1x32xf32, #tpu.memory_space<vmem>>, vector<1x32xf32>
    %cst_67 = arith.constant dense<0.000000e+00> : vector<8xf32>
    %166 = vector.multi_reduction <add>, %163, %cst_67 [1] : vector<8x32xf32> to vector<8xf32>
    %167 = vector.shape_cast %166 : vector<8xf32> to vector<8x1xf32>
    %cst_68 = arith.constant 3.200000e+01 : f32
    %168 = vector.broadcast %cst_68 : f32 to vector<8x1xf32>
    %169 = arith.divf %167, %168 : vector<8x1xf32>
    %170 = vector.broadcast %169 : vector<8x1xf32> to vector<8x32xf32>
    %171 = arith.subf %163, %170 : vector<8x32xf32>
    %172 = arith.mulf %171, %171 : vector<8x32xf32>
    %cst_69 = arith.constant dense<0.000000e+00> : vector<8xf32>
    %173 = vector.multi_reduction <add>, %172, %cst_69 [1] : vector<8x32xf32> to vector<8xf32>
    %174 = vector.shape_cast %173 : vector<8xf32> to vector<8x1xf32>
    %cst_70 = arith.constant 3.200000e+01 : f32
    %175 = vector.broadcast %cst_70 : f32 to vector<8x1xf32>
    %176 = arith.divf %174, %175 : vector<8x1xf32>
    %177 = vector.broadcast %169 : vector<8x1xf32> to vector<8x32xf32>
    %178 = arith.subf %163, %177 : vector<8x32xf32>
    %cst_71 = arith.constant 9.99999974E-6 : f32
    %179 = vector.broadcast %cst_71 : f32 to vector<8x1xf32>
    %180 = arith.addf %176, %179 : vector<8x1xf32>
    %181 = math.rsqrt %180 : vector<8x1xf32>
    %182 = vector.broadcast %181 : vector<8x1xf32> to vector<8x32xf32>
    %183 = arith.mulf %178, %182 : vector<8x32xf32>
    %184 = vector.broadcast %164 : vector<1x32xf32> to vector<8x32xf32>
    %185 = arith.mulf %183, %184 : vector<8x32xf32>
    %186 = vector.broadcast %165 : vector<1x32xf32> to vector<8x32xf32>
    %187 = arith.addf %185, %186 : vector<8x32xf32>
    %c0_72 = arith.constant 0 : index
    %c0_73 = arith.constant 0 : index
    %c0_74 = arith.constant 0 : index
    %188 = vector.load %arg19[%c0_72, %c0_73, %c0_74] : memref<1x8x32xf32, #tpu.memory_space<vmem>>, vector<1x8x32xf32>
    %189 = vector.shape_cast %188 : vector<1x8x32xf32> to vector<8x32xf32>
    %190 = vector.shape_cast %187 : vector<8x32xf32> to vector<1x8x32xf32>
    tpu.vector_store %arg19[%c0_72, %c0_73, %c0_74], %190 {strides = array<i32>} : memref<1x8x32xf32, #tpu.memory_space<vmem>>, vector<1x8x32xf32>,
    return
  }
  func.func @transform_0(%arg0: i32) -> (i32, i32, i32) {
    %c0_i32 = arith.constant 0 : i32
    %c0_i32_0 = arith.constant 0 : i32
    %c0_i32_1 = arith.constant 0 : i32
    return %arg0, %c0_i32, %c0_i32_0 : i32, i32, i32
  }
  func.func @transform_1(%arg0: i32) -> (i32, i32, i32) {
    %c0_i32 = arith.constant 0 : i32
    %c0_i32_0 = arith.constant 0 : i32
    %c0_i32_1 = arith.constant 0 : i32
    return %arg0, %c0_i32, %c0_i32_0 : i32, i32, i32
  }
  func.func @transform_2(%arg0: i32) -> (i32, i32) {
    %c0_i32 = arith.constant 0 : i32
    %c0_i32_0 = arith.constant 0 : i32
    %c0_i32_1 = arith.constant 0 : i32
    return %c0_i32, %c0_i32_0 : i32, i32
  }
  func.func @transform_3(%arg0: i32) -> (i32, i32) {
    %c0_i32 = arith.constant 0 : i32
    %c0_i32_0 = arith.constant 0 : i32
    %c0_i32_1 = arith.constant 0 : i32
    return %c0_i32, %c0_i32_0 : i32, i32
  }
  func.func @transform_4(%arg0: i32) -> (i32, i32) {
    %c0_i32 = arith.constant 0 : i32
    %c0_i32_0 = arith.constant 0 : i32
    %c0_i32_1 = arith.constant 0 : i32
    return %c0_i32, %c0_i32_0 : i32, i32
  }
  func.func @transform_5(%arg0: i32) -> (i32, i32) {
    %c0_i32 = arith.constant 0 : i32
    %c0_i32_0 = arith.constant 0 : i32
    %c0_i32_1 = arith.constant 0 : i32
    return %c0_i32, %c0_i32_0 : i32, i32
  }
  func.func @transform_6(%arg0: i32) -> (i32, i32) {
    %c0_i32 = arith.constant 0 : i32
    %c0_i32_0 = arith.constant 0 : i32
    %c0_i32_1 = arith.constant 0 : i32
    return %c0_i32, %c0_i32_0 : i32, i32
  }
  func.func @transform_7(%arg0: i32) -> (i32, i32) {
    %c0_i32 = arith.constant 0 : i32
    %c0_i32_0 = arith.constant 0 : i32
    %c0_i32_1 = arith.constant 0 : i32
    return %c0_i32, %c0_i32_0 : i32, i32
  }
  func.func @transform_8(%arg0: i32) -> (i32, i32) {
    %c0_i32 = arith.constant 0 : i32
    %c0_i32_0 = arith.constant 0 : i32
    %c0_i32_1 = arith.constant 0 : i32
    return %c0_i32, %c0_i32_0 : i32, i32
  }
  func.func @transform_9(%arg0: i32) -> (i32, i32) {
    %c0_i32 = arith.constant 0 : i32
    %c0_i32_0 = arith.constant 0 : i32
    %c0_i32_1 = arith.constant 0 : i32
    return %c0_i32, %c0_i32_0 : i32, i32
  }
  func.func @transform_10(%arg0: i32) -> (i32, i32) {
    %c0_i32 = arith.constant 0 : i32
    %c0_i32_0 = arith.constant 0 : i32
    %c0_i32_1 = arith.constant 0 : i32
    return %c0_i32, %c0_i32_0 : i32, i32
  }
  func.func @transform_11(%arg0: i32) -> (i32, i32) {
    %c0_i32 = arith.constant 0 : i32
    %c0_i32_0 = arith.constant 0 : i32
    %c0_i32_1 = arith.constant 0 : i32
    return %c0_i32, %c0_i32_0 : i32, i32
  }
  func.func @transform_12(%arg0: i32) -> (i32, i32) {
    %c0_i32 = arith.constant 0 : i32
    %c0_i32_0 = arith.constant 0 : i32
    %c0_i32_1 = arith.constant 0 : i32
    return %c0_i32, %c0_i32_0 : i32, i32
  }
  func.func @transform_13(%arg0: i32) -> (i32, i32) {
    %c0_i32 = arith.constant 0 : i32
    %c0_i32_0 = arith.constant 0 : i32
    %c0_i32_1 = arith.constant 0 : i32
    return %c0_i32, %c0_i32_0 : i32, i32
  }
  func.func @transform_14(%arg0: i32) -> (i32, i32) {
    %c0_i32 = arith.constant 0 : i32
    %c0_i32_0 = arith.constant 0 : i32
    %c0_i32_1 = arith.constant 0 : i32
    return %c0_i32, %c0_i32_0 : i32, i32
  }
  func.func @transform_15(%arg0: i32) -> (i32, i32) {
    %c0_i32 = arith.constant 0 : i32
    %c0_i32_0 = arith.constant 0 : i32
    %c0_i32_1 = arith.constant 0 : i32
    return %c0_i32, %c0_i32_0 : i32, i32
  }
  func.func @transform_16(%arg0: i32) -> (i32, i32) {
    %c0_i32 = arith.constant 0 : i32
    %c0_i32_0 = arith.constant 0 : i32
    %c0_i32_1 = arith.constant 0 : i32
    return %c0_i32, %c0_i32_0 : i32, i32
  }
  func.func @transform_17(%arg0: i32) -> (i32, i32) {
    %c0_i32 = arith.constant 0 : i32
    %c0_i32_0 = arith.constant 0 : i32
    %c0_i32_1 = arith.constant 0 : i32
    return %c0_i32, %c0_i32_0 : i32, i32
  }
  func.func @transform_18(%arg0: i32) -> (i32, i32, i32) {
    %c0_i32 = arith.constant 0 : i32
    %c0_i32_0 = arith.constant 0 : i32
    %c0_i32_1 = arith.constant 0 : i32
    return %arg0, %c0_i32, %c0_i32_0 : i32, i32, i32
  }
}

</mosaic_0001>

<bundles_post_ra>
// kernel: tpu_custom_call.1
= control target key start
LH: loop header
LB: loop body
LE: loop exit
PB: predicated region body
PF: predicated region fallthrough
CT: control target
= control target key end

     0   :  { %s2788_s0 = inlined_call_operand.vmem [shape: f32[2,8,32], index: 0, kind: input, shape index: {}]   ;;  %s2789_s1 = inlined_call_operand.vmem [shape: f32[2,8,32], index: 1, kind: input, shape index: {}]   ;;  %s2790_s2 = inlined_call_operand.hbm [shape: f32[8,32], index: 2, kind: input, shape index: {}]   ;;  %s2791_s3 = inlined_call_operand.vmem [shape: f32[1,32], index: 3, kind: input, shape index: {}]   ;;  %s2792_s4 = inlined_call_operand.vmem [shape: f32[1,32], index: 4, kind: input, shape index: {}]   ;;  %s2793_s5 = inlined_call_operand.vmem [shape: bf16[32,32], index: 5, kind: input, shape index: {}]   ;;  %s2794_s6 = inlined_call_operand.hbm [shape: bf16[32,32], index: 6, kind: input, shape index: {}]   ;;  %s2795_s7 = inlined_call_operand.hbm [shape: bf16[32,32], index: 7, kind: input, shape index: {}]   ;;  %s2796_s8 = inlined_call_operand.hbm [shape: bf16[32,32], index: 8, kind: input, shape index: {}]   ;;  %s2797_s9 = inlined_call_operand.vmem [shape: bf16[32,32], index: 9, kind: input, shape index: {}]   ;;  %s2798_s10 = inlined_call_operand.vmem [shape: f32[1,32], index: 10, kind: input, shape index: {}]   ;;  %s2799_s11 = inlined_call_operand.vmem [shape: f32[1,32], index: 11, kind: input, shape index: {}]   ;;  %s2800_s12 = inlined_call_operand.hbm [shape: bf16[32,64], index: 12, kind: input, shape index: {}]   ;;  %s2801_s13 = inlined_call_operand.vmem [shape: f32[1,64], index: 13, kind: input, shape index: {}]   ;;  %s2802_s14 = inlined_call_operand.vmem [shape: bf16[64,32], index: 14, kind: input, shape index: {}]   ;;  %s2803_s15 = inlined_call_operand.vmem [shape: f32[1,32], index: 15, kind: input, shape index: {}]   ;;  %s2804_s16 = inlined_call_operand.vmem [shape: f32[1,32], index: 16, kind: input, shape index: {}]   ;;  %s2805_s17 = inlined_call_operand.vmem [shape: f32[1,32], index: 17, kind: input, shape index: {}]   ;;  %s2806_s18 = inlined_call_operand.hbm [shape: f32[2,8,32], index: 18, kind: output, shape index: {}]  }
   0x1   :  { %2825 = sst [smem:[#allocation24_spill]] %s2788_s0 }
   0x2   :  { %2826 = sst [smem:[#allocation25_spill]] %s2789_s1 }
   0x3   :  { %2827 = sst [smem:[#allocation26_spill]] %s2790_s2 }
   0x4   :  { %2828 = sst [smem:[#allocation27_spill]] %s2804_s16 }
   0x5   :  { %2829 = sst [smem:[#allocation28_spill]] %s2805_s17 }
   0x6   :  { %2830 = sst [smem:[#allocation29_spill]] %s2806_s18 }
   0x7   :  { %23 = vsyncpa [#allocation3], 0 }
   0x8   :  { %24 = vsyncpa [#allocation6], 0 }
   0x9   :  { %25 = vsyncpa [#allocation9], 0 }
   0xa   :  { %26 = vsyncpa [#allocation4], 0 }
   0xb   :  { %28 = vsyncpa [#allocation4 + $0x1], 0  ;;  %s2386_s27 = smov 0   ;;  %s2388_s28 = smov 0  }
   0xc   :  { %s2390_s29 = smov 0   ;;  %s2392_s30 = smov 0  }
   0xd LB: > { %2831 = sst [smem:[#allocation16_spill]] %s2261_s27  ;;  %s2407_s0 = sadd.s32 4294967295, %s2273_s30   ;;  %s2273_s30 = sphi %s2392_s30, %s2866_s30   ;;  %s2269_s29 = sphi %s2390_s29, %s2869_s29   ;;  %s2265_s28 = sphi %s2388_s28, %s2868_s28   ;;  %s2261_s27 = sphi %s2386_s27, %s2867_s27  }
   0xe   : > { %2832 = sst [smem:[#allocation17_spill]] %s2265_s28  ;;  %s1742_s19 = sadd.s32 4294967294, %s2273_s30  }
   0xf   : > { %2833 = sst [smem:[#allocation18_spill]] %s2269_s29  ;;  %s2411_s1 = sadd.s32 1, %s2273_s30  }
  0x10   : > { %2834 = sst [smem:[#allocation19_spill]] %s2273_s30  ;;  %s429_s20 = sadd.s32 1, %s2269_s29 }
  0x11   : > { %2835 = sst [smem:[#allocation20_spill]] %s2411_s1  ;;  %s426_s21 = ssub.s32 %s2273_s30, %s2411_s1 }
  0x12   : > { %p439_p0 = scmp.ne.s32.totalorder %s2269_s29, %s2265_s28  ;;  %p427_p1 = scmp.eq.s32.totalorder %s426_s21, 0 }
  0x13   : > { %p440_p2 = scmp.eq.s32.totalorder %s2407_s0, 1  ;;  %p445_p3 = scmp.ne.s32.totalorder %s2265_s28, %s2261_s27 }
  0x14   : > { %p446_p4 = scmp.eq.s32.totalorder %s1742_s19, 1  ;;  %p1743_p7 = scmp.ge.s32.totalorder %s2273_s30, 1 }
  0x15   : > { %s2422_s22 = scalar_select %p427_p1, %s2269_s29, %s429_s20  }
  0x16   : > { %p2424_p5 = por %p440_p2, %p439_p0  ;;  %p2428_p6 = por %p446_p4, %p445_p3 }
  0x17   : > { %2836 = sst [smem:[#allocation21_spill]] %s2422_s22  ;;  %p453_p8 = scmp.lt.s32.totalorder %s2273_s30, 3 }
  0x18   : > { %s2837_s2 = scalar_select %p2424_p5, 1, 0 }
  0x19   : > { %s2839_s23 = scalar_select %p2428_p6, 1, 0 }
  0x1a   : > { %2838 = sst [smem:[#allocation22_spill]] %s2837_s2  ;;  %p2815_p9 = scmp.eq.s32.totalorder %s2407_s0, 0 }
  0x1b   : > { %2840 = sst [smem:[#allocation23_spill]] %s2839_s23  ;;  %p2435_p10 = pnand %p1743_p7, %p453_p8 }
  0x1c   : > { %s2275_s25 = smov [#allocation5]   ;;  %s2276_s20 = smov [#allocation8]  }
  0x1d   : > { %s2841_s24 = scalar_select %p2435_p10, 1, 0 }
  0x1e   : > { %s485_s26 = sshll.u32 %s2275_s25, 4  ;;  %p1953_p11 = pneg %p2435_p10  ;;  %s2441_s26 = int_to_ptr.vmem [resolvable:$true] %s485_s26 }
  0x1f   : > { %s511_s21 = sshll.u32 %s2276_s20, 4  ;;  %s2277_s22 = smov [#allocation2]   ;;  %s2449_s21 = int_to_ptr.vmem [resolvable:$true] %s511_s21 }
  0x20   : > { %p2445_p12 = pnand %p2815_p9, %p1953_p11  ;;  %s2451_s29 = sshll.u32 %s2277_s22, 4  ;;  %s467_s29 = int_to_ptr.vmem [resolvable:$true] %s2451_s29 }
  0x21   : > { %s2059_s25 = scalar_lea.hbm %s2794_s6, 256 }
  0x22   : > { %p2060_p13 = scmp.ne.s32.totalorder %s2794_s6, %s2059_s25  ;;  %p2461_p0 = pneg %p2445_p12 }
  0x23   : > { %p2066_p3 = scmp.lt.u32.totalorder %s2059_s25, %s2794_s6 }
  0x24   : > { %p2062_p1 = pnand %p2461_p0, %p2060_p13 }
  0x26   : > { %p2063_p2 = pneg %p2062_p1 }
  0x28   : > { %p2068_p4 = pnand %p2066_p3, %p2063_p2 }
  0x2a   : > { %2071 = shalt.err (!%p2068_p4)
}
  0x2b   : > { %s2072_s27 = scalar_lea.vmem %s2441_s26, 256  ;;  %p2080_p9 = scmp.lt.s32.totalorder %s2441_s26, %s2441_s26 }
  0x2c   : > { %p2073_p7 = scmp.ne.s32.totalorder %s2441_s26, %s2072_s27  ;;  %p2081_p6 = scmp.lt.s32.totalorder %s2072_s27, %s2072_s27 }
  0x2e   : > { %p2075_p8 = pnand %p2073_p7, %p2461_p0  ;;  %p2082_p13 = por %p2081_p6, %p2080_p9 }
  0x30   : > { %p2076_p11 = pneg %p2075_p8 }
  0x32   : > { %p2083_p1 = pnand %p2082_p13, %p2076_p11 }
  0x34   : > { %2086 = shalt.err (!%p2083_p1)
}
  0x35   : > { %s2821_s30 = smov 64   ;;  %s2823_s1 = smov 4  }
  0x36   : > { %1959 = dma.hbm_to_vmem [thread:$0]  (!%p2445_p12), %s2794_s6, 256, %s2441_s26, [#allocation6], %s2821_s30, %s2821_s30, %s2823_s1  }
  0x37   : > { %s2087_s27 = scalar_lea.hbm %s2796_s8, 256 }
  0x38   : > { %p2088_p6 = scmp.ne.s32.totalorder %s2796_s8, %s2087_s27  ;;  %p2094_p3 = scmp.lt.u32.totalorder %s2087_s27, %s2796_s8 }
  0x3a   : > { %p2090_p9 = pnand %p2088_p6, %p2461_p0 }
  0x3c   : > { %p2091_p2 = pneg %p2090_p9 }
  0x3e   : > { %p2096_p4 = pnand %p2094_p3, %p2091_p2 }
  0x40   : > { %2099 = shalt.err (!%p2096_p4)
}
  0x41   : > { %s2100_s26 = scalar_lea.vmem %s2449_s21, 256  ;;  %p2108_p13 = scmp.lt.s32.totalorder %s2449_s21, %s2449_s21 }
  0x42   : > { %p2101_p7 = scmp.ne.s32.totalorder %s2449_s21, %s2100_s26  ;;  %p2109_p1 = scmp.lt.s32.totalorder %s2100_s26, %s2100_s26 }
  0x44   : > { %p2103_p8 = pnand %p2101_p7, %p2461_p0  ;;  %p2110_p6 = por %p2109_p1, %p2108_p13 }
  0x46   : > { %p2104_p11 = pneg %p2103_p8 }
  0x48   : > { %p2111_p9 = pnand %p2110_p6, %p2104_p11 }
  0x4a   : > { %2114 = shalt.err (!%p2111_p9)
}
  0x4b   : > { %1965 = dma.hbm_to_vmem [thread:$0]  (!%p2445_p12), %s2796_s8, 256, %s2449_s21, [#allocation9], %s2821_s30, %s2821_s30, %s2823_s1  }
  0x4c   : > { %s2844_s23 = sld [smem:[#allocation26_spill]] }
  0x52   : > { %s2115_s25 = scalar_lea.hbm %s2844_s23, 128 }
  0x53   : > { %p2116_p2 = scmp.ne.s32.totalorder %s2844_s23, %s2115_s25  ;;  %p2122_p7 = scmp.lt.u32.totalorder %s2115_s25, %s2844_s23 }
  0x55   : > { %p2118_p3 = pnand %p2116_p2, %p2461_p0 }
  0x57   : > { %p2119_p4 = pneg %p2118_p3 }
  0x59   : > { %p2124_p8 = pnand %p2122_p7, %p2119_p4 }
  0x5b   : > { %2127 = shalt.err (!%p2124_p8)
}
  0x5c   : > { %s2128_s16 = scalar_lea.vmem %s467_s29, 128  ;;  %p2136_p6 = scmp.lt.s32.totalorder %s467_s29, %s467_s29 }
  0x5d   : > { %p2129_p11 = scmp.ne.s32.totalorder %s467_s29, %s2128_s16  ;;  %p2137_p9 = scmp.lt.s32.totalorder %s2128_s16, %s2128_s16 }
  0x5f   : > { %p2131_p13 = pnand %p2129_p11, %p2461_p0  ;;  %p2138_p5 = por %p2137_p9, %p2136_p6 }
  0x61   : > { %p2132_p1 = pneg %p2131_p13 }
  0x63   : > { %p2139_p10 = pnand %p2138_p5, %p2132_p1 }
  0x65   : > { %2142 = shalt.err (!%p2139_p10)
}
  0x66   : > { %1956 = dma.hbm_to_vmem [thread:$0]  (!%p2445_p12), %s2844_s23, 128, %s467_s29, [#allocation3]  }
  0x67   : > { %s2280_s28 = smov [#allocation7]   ;;  %s2281_s25 = smov [#allocation10]  }
  0x68   : > { %s498_s2 = sshll.u32 %s2280_s28, 4  ;;  %s533_s20 = sshll.u32 %s2281_s25, 4  ;;  %s499_s2 = int_to_ptr.vmem [resolvable:$true] %s498_s2  ;;  %s534_s20 = int_to_ptr.vmem [resolvable:$true] %s533_s20 }
  0x69   : > { %s2143_s26 = scalar_lea.hbm %s2795_s7, 256 }
  0x6a   : > { %p2144_p5 = scmp.ne.s32.totalorder %s2795_s7, %s2143_s26  ;;  %p2150_p3 = scmp.lt.u32.totalorder %s2143_s26, %s2795_s7 }
  0x6c   : > { %p2146_p10 = pnand %p2144_p5, %p2461_p0 }
  0x6e   : > { %p2147_p2 = pneg %p2146_p10 }
  0x70   : > { %p2152_p4 = pnand %p2150_p3, %p2147_p2 }
  0x72   : > { %2155 = shalt.err (!%p2152_p4)
}
  0x73   : > { %s2156_s29 = scalar_lea.vmem %s499_s2, 256  ;;  %p2164_p13 = scmp.lt.s32.totalorder %s499_s2, %s499_s2 }
  0x74   : > { %p2157_p7 = scmp.ne.s32.totalorder %s499_s2, %s2156_s29  ;;  %p2165_p1 = scmp.lt.s32.totalorder %s2156_s29, %s2156_s29 }
  0x76   : > { %p2159_p8 = pnand %p2157_p7, %p2461_p0  ;;  %p2166_p6 = por %p2165_p1, %p2164_p13 }
  0x78   : > { %p2160_p11 = pneg %p2159_p8 }
  0x7a   : > { %p2167_p9 = pnand %p2166_p6, %p2160_p11 }
  0x7c   : > { %2170 = shalt.err (!%p2167_p9)
}
  0x7d   : > { %s2845_s30 = smov 4   ;;  %s2846_s17 = smov 64  }
  0x7e   : > { %1962 = dma.hbm_to_vmem [thread:$0]  (!%p2445_p12), %s2795_s7, 256, %s499_s2, [#allocation6], %s2846_s17, %s2846_s17, %s2845_s30  }
  0x7f   : > { %s2171_s27 = scalar_lea.hbm %s2800_s12, 256 }
  0x80   : > { %p2172_p5 = scmp.ne.s32.totalorder %s2800_s12, %s2171_s27  ;;  %p2178_p3 = scmp.lt.u32.totalorder %s2171_s27, %s2800_s12 }
  0x82   : > { %p2174_p10 = pnand %p2172_p5, %p2461_p0 }
  0x84   : > { %p2175_p2 = pneg %p2174_p10 }
  0x86   : > { %p2180_p4 = pnand %p2178_p3, %p2175_p2 }
  0x88   : > { %2183 = shalt.err (!%p2180_p4)
}
  0x89   : > { %s2184_s1 = scalar_lea.vmem %s534_s20, 256  ;;  %p2192_p13 = scmp.lt.s32.totalorder %s534_s20, %s534_s20 }
  0x8a   : > { %p2185_p7 = scmp.ne.s32.totalorder %s534_s20, %s2184_s1  ;;  %p2193_p1 = scmp.lt.s32.totalorder %s2184_s1, %s2184_s1 }
  0x8c   : > { %p2187_p8 = pnand %p2185_p7, %p2461_p0  ;;  %p2194_p6 = por %p2193_p1, %p2192_p13 }
  0x8e   : > { %p2188_p11 = pneg %p2187_p8 }
  0x90   : > { %p2195_p9 = pnand %p2194_p6, %p2188_p11 }
  0x92   : > { %2198 = shalt.err (!%p2195_p9)
}
  0x93   : > { %1968 = dma.hbm_to_vmem [thread:$0]  (!%p2445_p12), %s2800_s12, 256, %s534_s20, [#allocation9], %s2846_s17, %s2846_s17, %s2845_s30  }
  0x94   : > { %p2847_p5 = scmp.ne.s32.totalorder %s2841_s24, 0 }
  0x95   : > { %p2848_p0 = scmp.eq.s32.totalorder (!%p2847_p5), %s2407_s0, 0 }
  0x96   : > { %578 = sbr.rel (%p2847_p5) target bundleno = 3147 (0xc4b), region = 92 }
  0x9d   : > { %2244 = dma.done.wait (%p2848_p0), [#allocation3], 128   ;;  %p2849_p10 = pmov %p2848_p0 }
  0x9e   : > { %p2850_p2 = pmov %p2848_p0 }
  0x9f   : > { %2246 = vsyncadd (%p2849_p10), [#allocation3], 4294967168 }
  0xa0   : > { %2248 = dma.done.wait (%p2850_p2), [#allocation6], 512   ;;  %p2851_p3 = pmov %p2848_p0 }
  0xa1   : > { %p2852_p4 = pmov %p2848_p0 }
  0xa2   : > { %2250 = vsyncadd (%p2851_p3), [#allocation6], 4294966784 }
  0xa3   : > { %2252 = dma.done.wait (%p2852_p4), [#allocation9], 512   ;;  %p2853_p12 = pmov %p2848_p0 }
  0xa4   : > { %p651_p7 = scmp.lt.s32.totalorder %s2407_s0, 1  ;;  %v2282_v0 = vmov 0.0   ;;  %vm2283_vm0 = vmmov 0   ;;  %s2854_s30 = sld [smem:[#allocation24_spill]]  ;;  %v2031_v1 = vld [vmem:[%s2793_s5] sm:$0xff]   ;;  %v2032_v2 = vld [vmem:[%s2793_s5 + $0x8] sm:$0xff]  }
  0xa5   : > { %2254 = vsyncadd (%p2853_p12), [#allocation9], 4294966784  ;;  %1835 = vmatprep.subr.bf16.mxu1 %v2282_v0  ;;  %1839 = vmatprep.mubr.msk.bf16.mxu1 %vm2283_vm0, %v2282_v0  ;;  %s2855_s29 = sld [smem:[#allocation25_spill]]  ;;  %vm682_vm1 = vcmask 261120   ;;  %v2033_v5 = vld [vmem:[#allocation5] sm:$0xff]   ;;  %v2034_v6 = vld [vmem:[#allocation5 + $0x8] sm:$0xff]  }
  0xa6   : > { %s652_s18 = scalar_select %p651_p7, %s2407_s0, 1  ;;  %1851 = vmatprep.subr.bf16.mxu0 %v2282_v0  ;;  %1855 = vmatprep.mubr.msk.bf16.mxu0 %vm2283_vm0, %v2282_v0  ;;  %v2035_v9 = vld [vmem:[#allocation8] sm:$0xff]   ;;  %v2036_v10 = vld [vmem:[#allocation8 + $0x8] sm:$0xff]   ;;  %v662_v11 = vld [vmem:[#allocation2] sm:$0xff]  ;;  %vm948_vm2 = vcmask 130048   ;;  %vm1238_vm3 = vcmask 1043456  }
  0xa7   : > { %1836 = vmatpush3.bf16.msra.mxu1 %v2031_v1  ;;  %v665_v12 = vpack.c.bf16 %v662_v11, %v662_v11  ;;  %v2037_v13 = vld [vmem:[#allocation7] sm:$0xff]   ;;  %v2038_v14 = vld [vmem:[#allocation7 + $0x8] sm:$0xff]   ;;  %vm1047_vm4 = vcmask 1046528   ;;  %s2285_s20 = smov 9   ;;  %vm1058_vm5 = vcmask 64512   ;;  %vm1061_vm6 = vcmask 72704  }
  0xa8   : > { %s1757_s24 = sshll.u32 %s652_s18, 3  ;;  %1837 = vmatprep.subr.bf16.mxu1 %v2282_v0  ;;  %1852 = vmatpush3.bf16.msra.mxu0 %v2037_v13  ;;  %v1771_v19 = vld [vmem:[%s2791_s3] ss:$0 sm:$0xff]  ;;  %s2284_s18 = smov 112   ;;  %vm1091_vm8 = vcmask 121856   ;;  %vm1109_vm10 = vcmask 105472  }
  0xa9   : > { %1853 = vmatprep.subr.bf16.mxu0 %v2282_v0  ;;  %v1772_v26 = vld [vmem:[%s2792_s4] ss:$0 sm:$0xff]  ;;  %s2288_s25 = smov 124   ;;  %s2289_s21 = smov 16   ;;  %vm1532_vm12 = vcmask 523264  }
  0xaa   : > { %s654_s17 = scalar_lea.vmem %s2854_s30, %s1757_s24  ;;  %s2286_s30 = smov 127  }
  0xab   : > { %v2603_v3 = vld [vmem:[%s654_s17] sm:$0xff]  ;;  %s658_s1 = scalar_lea.vmem %s2855_s29, %s1757_s24  ;;  %1838 = vmatpush3.bf16.msra.mxu1 %v2032_v2  ;;  %s2287_s17 = smov 126  }
  0xac   : > { %v663_v4 = vpack.c.bf16 %v2603_v3, %v2603_v3  ;;  %1843 = vmatprep.subr.bf16.mxu1 %v2282_v0  ;;  %v661_v7 = vld [vmem:[%s658_s1] sm:$0xff]  ;;  %1854 = vmatpush3.bf16.msra.mxu0 %v2038_v14  ;;  %s2856_s29 = sld [smem:[#allocation17_spill]]  ;;  %s2857_s28 = sld [smem:[#allocation22_spill]] }
  0xad   : > { %v664_v8 = vpack.c.bf16 %v661_v7, %v661_v7  ;;  %1867 = vmatprep.subr.bf16.mxu0 %v2282_v0  ;;  %s2858_s19 = sld [smem:[#allocation27_spill]] }
  0xae   : > { %1840 = vmatmul.mubr.msk.bf16.vlgmr.msra.gmra.mrb[0].mxu1 %vm682_vm1, %v663_v4 }
  0xaf   : > { %1844 = vmatpush3.bf16.msra.mxu1 %v2033_v5  ;;  %1847 = vmatprep.mubr.msk.bf16.mxu1 %vm2283_vm0, %v2282_v0 }
  0xb0   : > { %1845 = vmatprep.subr.bf16.mxu1 %v2282_v0  ;;  %1856 = vmatmul.mubr.msk.bf16.vlgmr.msra.gmra.mrb[0].mxu0 %vm682_vm1, %v664_v8 }
  0xb1   : > { %1869 = vmatprep.mubr.msk.bf16.mxu0 %vm2283_vm0, %v2282_v0 }
  0xb2   : > { %s648_s1 = sand.u32 1, %s2856_s29   ;;  %p2861_p11 = scmp.ne.s32.totalorder %s2857_s28, 0 }
  0xb3   : > { %1846 = vmatpush3.bf16.msra.mxu1 %v2034_v6  ;;  %s1756_s2 = sshll.u32 %s648_s1, 3 }
  0xb4   : > { %1859 = vmatprep.subr.bf16.mxu1 %v2282_v0  ;;  %s650_s22 = scalar_lea.vmem [#allocation11], %s1756_s2 }
  0xb5   : > { %s1621_s27 = sshll.u32 %s650_s22, 4  ;;  %s2747_s27 = int_to_ptr.vmem [resolvable:$true] %s1621_s27 }
  0xb6   : > { %1848 = vmatmul.mubr.msk.bf16.vlgmr.msra.gmra.mrb[4].mxu1 %vm682_vm1, %v664_v8  ;;  %s2199_s24 = scalar_lea.vmem %s2747_s27, 128 }
  0xb7   : > { %1860 = vmatpush3.bf16.msra.mxu1 %v2035_v9  ;;  %1863 = vmatprep.mubr.msk.bf16.mxu1 %vm2283_vm0, %v2282_v0  ;;  %p2200_p8 = scmp.ne.s32.totalorder %s2747_s27, %s2199_s24 }
  0xb8   : > { %1861 = vmatprep.subr.bf16.mxu1 %v2282_v0 }
  0xb9   : > { %p2201_p13 = pnand %p2200_p8, %p2861_p11 }
  0xbb   : > { %1862 = vmatpush3.bf16.msra.mxu1 %v2036_v10  ;;  %p2202_p1 = pneg %p2201_p13 }
  0xbc   : > { %1873 = vmatprep.subr.bf16.mxu1 %v2282_v0 }
  0xbe   : > { %1864 = vmatmul.mubr.msk.bf16.vlgmr.msra.gmra.mrb[8].mxu1 %vm682_vm1, %v665_v12 }
  0xbf   : > { %1875 = vmatprep.mubr.msk.bf16.mxu1 %vm2283_vm0, %v2282_v0 }
 0x181   : > { %v720_v15 = vpop.f32.mrb[0].mxu1 }
 0x182   : > { %v1841_v16 = vpop.f32.mrb[1].mxu1  ;;  %v907_v20 = vadd.f32 %v1771_v19, %v720_v15  ;;  %v916_v27 = vadd.f32 %v1772_v26, %v720_v15 }
 0x183   : > { %v723_v17 = vpop.f32.mrb[2].mxu1  ;;  %v2650_v39 = vpop.f32.mrb[0].mxu0  ;;  %v1064_v16 = vlaneseq }
 0x184   : > { %v1842_v18 = vpop.f32.mrb[3].mxu1  ;;  %v908_v24 = vmul.f32 0.25, %v907_v20  ;;  %v917_v32 = vmul.f32 0.25, %v916_v27  ;;  %v1857_v40 = vpop.f32.mrb[1].mxu0  ;;  %v940_v53 = vpack.c.bf16 %v2650_v39, %v2650_v39 }
 0x185   : > { %v838_v41 = vpop.f32.mrb[2].mxu0  ;;  %v1065_v17 = vshrl.u32 %v1064_v16, 7 }
 0x186   : > { %v928_v36 = vpack.c.bf16 %v917_v32, %v917_v32  ;;  %v922_v38 = vpack.c.bf16 %v908_v24, %v908_v24  ;;  %v1858_v42 = vpop.f32.mrb[3].mxu0  ;;  %v1240_v54 = vsel %vm1238_vm3, %v940_v53, 0 }
 0x187   : > { %v1066_v18 = vsub.s32 7, %v1065_v17 }
 0x189   : > { %v779_v21 = vpop.f32.mrb[4].mxu1  ;;  %v1077_v19 = vand.u32 1, %v1066_v18  ;;  %v1094_v26 = vshra.s32 %v1066_v18, 1 }
 0x18a   : > { %931 = vrot.lane.b32.xlu1 %v779_v21, %s2284_s18  ;;  %v1849_v22 = vpop.f32.mrb[5].mxu1  ;;  %v934_v35 = vpack.c.bf16 %v779_v21, %v779_v21 }
 0x18b   : > { %v782_v23 = vpop.f32.mrb[6].mxu1  ;;  %vm1078_vm7 = vcmp.eq.s32.totalorder %v1077_v19, 1  ;;  %v1095_v27 = vand.u32 1, %v1094_v26 }
 0x18c   : > { %v1850_v25 = vpop.f32.mrb[7].mxu1  ;;  %v1123_v37 = vsel %vm948_vm2, %v934_v35, 0 }
 0x18d   : > { %vm1096_vm9 = vcmp.eq.s32.totalorder %v1095_v27, 1 }
 0x18e   : > { %919 = vrot.lane.b32.xlu1 %v908_v24, %s2284_s18 }
 0x191   : > { %v894_v28 = vpop.f32.mrb[8].mxu1 }
 0x192   : > { %v946_v29 = vpack.c.bf16 %v894_v28, %v894_v28  ;;  %943 = vrot.lane.b32.xlu0 %v894_v28, %s2284_s18  ;;  %v1865_v30 = vpop.f32.mrb[9].mxu1 }
 0x193   : > { %v897_v31 = vpop.f32.mrb[10].mxu1 }
 0x194   : > { %v1866_v33 = vpop.f32.mrb[11].mxu1  ;;  %v953_v34 = vsel %vm948_vm2, %v946_v29, 0 }
 0x195   : > { %1868 = vmatpush3.bf16.xpose.msra.mxu0 %v953_v34  ;;  %v1112_v34 = vshra.s32 %v1066_v18, 2 }
 0x196   : > { %925 = vrot.lane.b32.xlu0 %v917_v32, %s2284_s18  ;;  %1879 = vmatprep.subr.bf16.mxu0 %v2282_v0 }
 0x197   : > { %v1113_v35 = vand.u32 1, %v1112_v34  ;;  %v2044_v34 = vld [vmem:[%s2802_s14 + $0x8] sm:$0xff]  }
 0x199   : > { %vm1114_vm11 = vcmp.eq.s32.totalorder %v1113_v35, 1 }
 0x19c   : > { %1870 = vmatmul.mubr.msk.bf16.vlgmr.msra.gmra.mrb[4].mxu0 %vm948_vm2, %v928_v36 }
 0x19d   : > { %1880 = vmatpush3.bf16.xpose.msra.mxu0 %v1123_v37  ;;  %1881 = vmatprep.mubr.msk.bf16.mxu0 %vm2283_vm0, %v2282_v0 }
 0x19e   : > { %1891 = vmatprep.subr.bf16.mxu0 %v2282_v0 }
 0x1a4   : > { %1882 = vmatmul.mubr.msk.bf16.vlgmr.msra.gmra.mrb[8].mxu0 %vm948_vm2, %v922_v38 }
 0x1a5   : > { %1893 = vmatprep.mubr.msk.bf16.mxu0 %vm2283_vm0, %v2282_v0  ;;  %1892 = vmatpush3.bf16.msra.mxu0 %v1240_v54 }
 0x1a6   : > { %1903 = vmatprep.subr.bf16.mxu0 %v2282_v0 }
 0x1fc   : > { %v932_v46 = vpop.permute.xlu1 %931 }
 0x1fd   : > { %v935_v48 = vpack.c.bf16 %v932_v46, %v932_v46 }
 0x1ff   : > { %v1169_v50 = vsel %vm948_vm2, %v935_v48, 0 }
 0x200   : > { %v920_v51 = vpop.permute.xlu1 %919 }
 0x201   : > { %v923_v52 = vpack.c.bf16 %v920_v51, %v920_v51 }
 0x204   : > { %v944_v43 = vpop.permute.xlu0 %943 }
 0x205   : > { %v947_v44 = vpack.c.bf16 %v944_v43, %v944_v43 }
 0x207   : > { %v999_v45 = vsel %vm948_vm2, %v947_v44, 0 }
 0x208   : > { %1874 = vmatpush3.bf16.xpose.msra.mxu1 %v999_v45  ;;  %v926_v47 = vpop.permute.xlu0 %925 }
 0x209   : > { %1885 = vmatprep.subr.bf16.mxu1 %v2282_v0  ;;  %v929_v49 = vpack.c.bf16 %v926_v47, %v926_v47 }
 0x20f   : > { %1876 = vmatmul.mubr.msk.bf16.vlgmr.msra.gmra.mrb[12].mxu1 %vm948_vm2, %v929_v49 }
 0x210   : > { %1886 = vmatpush3.bf16.xpose.msra.mxu1 %v1169_v50  ;;  %1887 = vmatprep.mubr.msk.bf16.mxu1 %vm2283_vm0, %v2282_v0 }
 0x211   : > { %1897 = vmatprep.subr.bf16.mxu1 %v2282_v0 }
 0x217   : > { %1888 = vmatmul.mubr.msk.bf16.vlgmr.msra.gmra.mrb[16].mxu1 %vm948_vm2, %v923_v52 }
 0x218   : > { %1899 = vmatprep.mubr.msk.bf16.mxu1 %vm2283_vm0, %v2282_v0 }
 0x26f   : > { %v989_v55 = vpop.f32.mrb[4].mxu0 }
 0x270   : > { %v1043_v56 = vrot.slane %v989_v55, 1  ;;  %v1871_v57 = vpop.f32.mrb[5].mxu0  ;;  %v1059_v7 = vsel %vm1058_vm5, %v989_v55, 0.0 }
 0x271   : > { %v992_v58 = vpop.f32.mrb[6].mxu0 }
 0x272   : > { %v1872_v59 = vpop.f32.mrb[7].mxu0  ;;  %v1048_v60 = vsel %vm1047_vm4, %v1043_v56, 0.0 }
 0x273   : > { %1052 = vrot.lane.b32.xlu1 %v1048_v60, %s2285_s20 }
 0x277   : > { %v1159_v61 = vpop.f32.mrb[8].mxu0 }
 0x278   : > { %v1883_v62 = vpop.f32.mrb[9].mxu0 }
 0x279   : > { %v1162_v63 = vpop.f32.mrb[10].mxu0 }
 0x27a   : > { %v1884_v1 = vpop.f32.mrb[11].mxu0 }
 0x2e2   : > { %v1035_v2 = vpop.f32.mrb[12].mxu1 }
 0x2e3   : > { %v1044_v4 = vrot.slane %v1035_v2, 1  ;;  %v1877_v5 = vpop.f32.mrb[13].mxu1  ;;  %v1060_v20 = vsel %vm1058_vm5, %v1035_v2, 0.0 }
 0x2e4   : > { %v1038_v6 = vpop.f32.mrb[14].mxu1 }
 0x2e5   : > { %v1053_v8 = vpop.permute.xlu1 %1052  ;;  %v1878_v9 = vpop.f32.mrb[15].mxu1  ;;  %v1049_v10 = vsel %vm1047_vm4, %v1044_v4, 0.0 }
 0x2e6   : > { %1054 = vrot.lane.b32.xlu0 %v1049_v10, %s2285_s20  ;;  %v1062_v11 = vsel %vm1061_vm6, %v1059_v7, %v1053_v8  ;;  %v2039_v8 = vld [vmem:[%s2797_s9] sm:$0xff]  }
 0x2e7   : > { %1069 = vrot.lane.b32.xlu1 %v1062_v11, %s2286_s30 }
 0x2ea   : > { %v1205_v12 = vpop.f32.mrb[16].mxu1 }
 0x2eb   : > { %v1889_v13 = vpop.f32.mrb[17].mxu1 }
 0x2ec   : > { %v1208_v14 = vpop.f32.mrb[18].mxu1  ;;  %v2040_v13 = vld [vmem:[%s2797_s9 + $0x8] sm:$0xff]  }
 0x2ed   : > { %v1890_v15 = vpop.f32.mrb[19].mxu1 }
 0x358   : > { %v1055_v21 = vpop.permute.xlu0 %1054 }
 0x359   : > { %v1070_v22 = vpop.permute.xlu1 %1069  ;;  %v1063_v23 = vsel %vm1061_vm6, %v1060_v20, %v1055_v21 }
 0x35a   : > { %v1075_v24 = vsel %vm948_vm2, %v1070_v22, 0.0  ;;  %1071 = vrot.lane.b32.xlu0 %v1063_v23, %s2286_s30 }
 0x35b   : > { %v1081_v25 = vsel %vm1078_vm7, %v1075_v24, %v1062_v11 }
 0x35c   : > { %1085 = vrot.lane.b32.xlu1 %v1081_v25, %s2287_s17 }
 0x3cc   : > { %v1072_v28 = vpop.permute.xlu0 %1071 }
 0x3cd   : > { %v1076_v29 = vsel %vm948_vm2, %v1072_v28, 0.0 }
 0x3ce   : > { %v1086_v30 = vpop.permute.xlu1 %1085  ;;  %v1082_v31 = vsel %vm1078_vm7, %v1076_v29, %v1063_v23 }
 0x3cf   : > { %v1092_v32 = vsel %vm1091_vm8, %v1086_v30, 0.0  ;;  %1087 = vrot.lane.b32.xlu0 %v1082_v31, %s2287_s17  ;;  %s2859_s17 = sld [smem:[#allocation28_spill]] }
 0x3d0   : > { %v1099_v33 = vsel %vm1096_vm9, %v1092_v32, %v1081_v25  ;;  %v2041_v32 = vld [vmem:[#allocation10] sm:$0xff]  }
 0x3d1   : > { %1103 = vrot.lane.b32.xlu1 %v1099_v33, %s2288_s25 }
 0x441   : > { %v1088_v36 = vpop.permute.xlu0 %1087 }
 0x442   : > { %v1093_v37 = vsel %vm1091_vm8, %v1088_v36, 0.0 }
 0x443   : > { %v1104_v38 = vpop.permute.xlu1 %1103  ;;  %v1100_v40 = vsel %vm1096_vm9, %v1093_v37, %v1082_v31 }
 0x444   : > { %v1110_v41 = vsel %vm1109_vm10, %v1104_v38, 0.0  ;;  %1105 = vrot.lane.b32.xlu0 %v1100_v40, %s2288_s25  ;;  %s1797_s25 = sshll.u32 %s2407_s0, 7  ;;  %s2290_s0 = smov [#allocation11]  }
 0x445   : > { %v1117_v42 = vsel %vm1114_vm11, %v1110_v41, %v1099_v33  ;;  %v2042_v33 = vld [vmem:[#allocation10 + $0x8] sm:$0xff]   ;;  %s2203_s2 = sshll.u32 %s2290_s0, 4  ;;  %s2204_s2 = int_to_ptr.vmem [resolvable:$false] %s2203_s2 }
 0x446   : > { %v1160_v43 = vadd.f32 %v1159_v61, %v1117_v42  ;;  %v1783_v42 = vld [vmem:[%s2799_s11] ss:$0 sm:$0xff]  ;;  %p2206_p6 = scmp.lt.s32.totalorder %s2747_s27, %s2204_s2 }
 0x448   : > { %v1211_v44 = vsel %vm1058_vm5, %v1160_v43, -inf }
 0x449   : > { %1212 = vmax.xlane.f32.xlu1 %v1211_v44 }
 0x4b6   : > { %v1106_v45 = vpop.permute.xlu0 %1105 }
 0x4b7   : > { %v1111_v46 = vsel %vm1109_vm10, %v1106_v45, 0.0 }
 0x4b8   : > { %v1118_v47 = vsel %vm1114_vm11, %v1111_v46, %v1100_v40  ;;  %v1782_v40 = vld [vmem:[%s2798_s10] ss:$0 sm:$0xff]  ;;  %v2045_v46 = vld [vmem:[%s2802_s14 + $0x10] sm:$0xff]  }
 0x4b9   : > { %v1206_v48 = vadd.f32 %v1205_v12, %v1118_v47  ;;  %v2046_v47 = vld [vmem:[%s2802_s14 + $0x18] sm:$0xff]  }
 0x4bb   : > { %v1214_v49 = vsel %vm1058_vm5, %v1206_v48, -inf }
 0x4bc   : > { %1215 = vmax.xlane.f32.xlu0 %v1214_v49 }
 0x4d6   : > { %v1213_v50 = vpop.xlane.xlu1 %1212 }
 0x4d7   : > { %v1217_v51 = vsub.f32 %v1160_v43, %v1213_v50 }
 0x4d9   : > { %v1219_v52 = vmul.f32 1.442695, %v1217_v51 }
 0x4db   : > { %2047 = vpow2.f32 %v1219_v52 }
 0x4e5   : > { %v2048_v53 = vpop.eup %2047 }
 0x4e6   : > { %v1223_v54 = vsel %vm1058_vm5, %v2048_v53, 0.0 }
 0x4e7   : > { %1224 = vadd.xlane.f32.xlu1 %v1223_v54 }
 0x549   : > { %v1216_v55 = vpop.xlane.xlu0 %1215 }
 0x54a   : > { %v1218_v56 = vsub.f32 %v1206_v48, %v1216_v55  ;;  %v1784_v48 = vld [vmem:[%s2801_s13] ss:$0 sm:$0xff] }
 0x54c   : > { %v1221_v57 = vmul.f32 1.442695, %v1218_v56 }
 0x54e   : > { %2049 = vpow2.f32 %v1221_v57 }
 0x558   : > { %v2050_v58 = vpop.eup %2049 }
 0x559   : > { %v1226_v59 = vsel %vm1058_vm5, %v2050_v58, 0.0 }
 0x55a   : > { %1227 = vadd.xlane.f32.xlu0 %v1226_v59 }
 0x570   : > { %937 = vrot.lane.b32.xlu0 %v2650_v39, %s2284_s18  ;;  %s1608_s18 = scalar_lea.sflag [#allocation4], %s648_s1 }
 0x574   : > { %v1225_v60 = vpop.xlane.xlu1 %1224 }
 0x575   : > { %2051 = vrcp.f32 %v1225_v60 }
 0x57f   : > { %v2052_v61 = vpop.eup %2051 }
 0x580   : > { %v1231_v62 = vmul.f32 %v2052_v61, %v2048_v53 }
 0x582   : > { %v1233_v63 = vpack.c.bf16 %v1231_v62, %v1231_v62 }
 0x584   : > { %1894 = vmatmul.mubr.msk.bf16.vlgmr.msra.gmra.mrb[12].mxu0 %vm1058_vm5, %v1233_v63 }
 0x585   : > { %1907 = vmatprep.mubr.msk.bf16.mxu0 %vm2283_vm0, %v2282_v0  ;;  %1904 = vmatpush3.bf16.msra.mxu0 %v2039_v8 }
 0x586   : > { %1905 = vmatprep.subr.bf16.mxu0 %v2282_v0 }
 0x589   : > { %1906 = vmatpush3.bf16.msra.mxu0 %v2040_v13 }
 0x58a   : > { %1919 = vmatprep.subr.bf16.mxu0 %v2282_v0 }
 0x5e7   : > { %v1228_v1 = vpop.xlane.xlu0 %1227 }
 0x5e8   : > { %2053 = vrcp.f32 %v1228_v1 }
 0x5eb   : > { %v938_v2 = vpop.permute.xlu0 %937 }
 0x5ec   : > { %v941_v4 = vpack.c.bf16 %v938_v2, %v938_v2 }
 0x5ee   : > { %v1286_v5 = vsel %vm1238_vm3, %v941_v4, 0 }
 0x5ef   : > { %1898 = vmatpush3.bf16.msra.mxu1 %v1286_v5 }
 0x5f0   : > { %1911 = vmatprep.subr.bf16.mxu1 %v2282_v0 }
 0x5f2   : > { %v2054_v39 = vpop.eup %2053 }
 0x5f3   : > { %v1232_v6 = vmul.f32 %v2054_v39, %v2050_v58 }
 0x5f5   : > { %v1234_v7 = vpack.c.bf16 %v1232_v6, %v1232_v6 }
 0x5f7   : > { %1900 = vmatmul.mubr.msk.bf16.vlgmr.msra.gmra.mrb[20].mxu1 %vm1058_vm5, %v1234_v7 }
 0x5f8   : > { %1915 = vmatprep.mubr.msk.bf16.mxu1 %vm2283_vm0, %v2282_v0  ;;  %1912 = vmatpush3.bf16.msra.mxu1 %v2041_v32 }
 0x5f9   : > { %1913 = vmatprep.subr.bf16.mxu1 %v2282_v0 }
 0x5fc   : > { %1914 = vmatpush3.bf16.msra.mxu1 %v2042_v33 }
 0x657   : > { %v1276_v9 = vpop.f32.mrb[12].mxu0 }
 0x658   : > { %v1895_v10 = vpop.f32.mrb[13].mxu0 }
 0x659   : > { %v1279_v11 = vpop.f32.mrb[14].mxu0 }
 0x65a   : > { %v1896_v12 = vpop.f32.mrb[15].mxu0  ;;  %v1795_v11 = vld [vmem:[%s2859_s17] ss:$0 sm:$0xff] }
 0x6ca   : > { %v1322_v14 = vpop.f32.mrb[20].mxu1 }
 0x6cb   : > { %1329 = vrot.lane.b32.xlu1 %v1322_v14, %s2289_s21  ;;  %v1901_v15 = vpop.f32.mrb[21].mxu1  ;;  %s2860_s21 = sld [smem:[#allocation29_spill]] }
 0x6cc   : > { %v1325_v16 = vpop.f32.mrb[22].mxu1 }
 0x6cd   : > { %v1902_v17 = vpop.f32.mrb[23].mxu1 }
 0x6d1   : > { %s2745_s29 = scalar_lea.hbm %s2860_s21, %s1797_s25 }
 0x73d   : > { %v1330_v18 = vpop.permute.xlu1 %1329 }
 0x73e   : > { %v1332_v19 = vsel %vm948_vm2, %v1276_v9, %v1330_v18  ;;  %v1794_v9 = vld [vmem:[%s2858_s19] ss:$0 sm:$0xff]  ;;  %s2205_s19 = scalar_lea.vmem %s2204_s2, 256 }
 0x73f   : > { %v1333_v20 = vpack.c.bf16 %v1332_v19, %v1332_v19  ;;  %p2207_p9 = scmp.lt.s32.totalorder %s2205_s19, %s2199_s24 }
 0x741   : > { %1908 = vmatmul.mubr.msk.bf16.vlgmr.msra.gmra.mrb[16].mxu0 %vm682_vm1, %v1333_v20  ;;  %p2208_p5 = por %p2207_p9, %p2206_p6 }
 0x742   : > { %1927 = vmatprep.mubr.msk.bf16.mxu0 %vm2283_vm0, %v2282_v0 }
 0x743   : > { %p2209_p0 = pnand %p2208_p5, %p2202_p1 }
 0x814   : > { %v1387_v21 = vpop.f32.mrb[16].mxu0 }
 0x815   : > { %v1393_v22 = vadd.f32 %v1387_v21, %v2603_v3  ;;  %v1909_v23 = vpop.f32.mrb[17].mxu0  ;;  %v2043_v3 = vld [vmem:[%s2802_s14] sm:$0xff]  }
 0x816   : > { %v1390_v24 = vpop.f32.mrb[18].mxu0  ;;  %1920 = vmatpush3.bf16.msra.mxu0 %v2043_v3 }
 0x817   : > { %v1910_v25 = vpop.f32.mrb[19].mxu0  ;;  %v1396_v26 = vsel %vm682_vm1, %v1393_v22, 0.0  ;;  %1921 = vmatprep.subr.bf16.mxu0 %v2282_v0 }
 0x818   : > { %1397 = vadd.xlane.f32.xlu0 %v1396_v26 }
 0x81a   : > { %1922 = vmatpush3.bf16.msra.mxu0 %v2044_v34 }
 0x81b   : > { %1923 = vmatprep.subr.bf16.mxu0 %v2282_v0 }
 0x81e   : > { %1924 = vmatpush3.bf16.msra.mxu0 %v2045_v46 }
 0x81f   : > { %1925 = vmatprep.subr.bf16.mxu0 %v2282_v0  ;;  %v1788_v0 = vld [vmem:[%s2803_s15] ss:$0 sm:$0xff] }
 0x822   : > { %1926 = vmatpush3.bf16.msra.mxu0 %v2046_v47 }
 0x8a5   : > { %v1398_v27 = vpop.xlane.xlu0 %1397 }
 0x8a6   : > { %v1400_v28 = vmul.f32 0.03125, %v1398_v27 }
 0x8a8   : > { %v1401_v29 = vsub.f32 %v1393_v22, %v1400_v28 }
 0x8aa   : > { %v1402_v30 = vmul.f32 %v1401_v29, %v1401_v29 }
 0x8ac   : > { %v1403_v31 = vsel %vm682_vm1, %v1402_v30, 0.0 }
 0x8ad   : > { %1404 = vadd.xlane.f32.xlu1 %v1403_v31 }
 0x93a   : > { %v1405_v35 = vpop.xlane.xlu1 %1404 }
 0x93b   : > { %v1406_v36 = vmul.f32 0.03125, %v1405_v35 }
 0x93d   : > { %v1407_v37 = vadd.f32 1e-05, %v1406_v36 }
 0x93f   : > { %2055 = vrsqrt.f32 %v1407_v37 }
 0x949   : > { %v2056_v38 = vpop.eup %2055 }
 0x94a   : > { %v1409_v41 = vmul.f32 %v2056_v38, %v1401_v29 }
 0x94c   : > { %v1416_v43 = vmul.f32 %v1782_v40, %v1409_v41 }
 0x94e   : > { %v1423_v44 = vadd.f32 %v1783_v42, %v1416_v43 }
 0x950   : > { %v1424_v45 = vpack.c.bf16 %v1423_v44, %v1423_v44 }
 0x952   : > { %1916 = vmatmul.mubr.msk.bf16.vlgmr.msra.gmra.mrb[24].mxu1 %vm682_vm1, %v1424_v45 }
 0xa25   : > { %v1485_v49 = vpop.f32.mrb[24].mxu1 }
 0xa26   : > { %v1486_v50 = vadd.f32 %v1784_v48, %v1485_v49  ;;  %v1917_v51 = vpop.f32.mrb[25].mxu1 }
 0xa27   : > { %v1488_v52 = vpop.f32.mrb[26].mxu1 }
 0xa28   : > { %v1491_v53 = vmax.f32 %v1486_v50, 0.0  ;;  %v1918_v54 = vpop.f32.mrb[27].mxu1 }
 0xa2a   : > { %v1492_v55 = vpack.c.bf16 %v1491_v53, %v1491_v53 }
 0xa2c   : > { %1928 = vmatmul.mubr.msk.bf16.vlgmr.msra.gmra.mrb[20].mxu0 %vm1532_vm12, %v1492_v55 }
 0xaff   : > { %v1570_v56 = vpop.f32.mrb[20].mxu0 }
 0xb00   : > { %v1571_v57 = vadd.f32 %v1788_v0, %v1570_v56  ;;  %v1929_v58 = vpop.f32.mrb[21].mxu0 }
 0xb01   : > { %v1573_v59 = vpop.f32.mrb[22].mxu0 }
 0xb02   : > { %v1930_v60 = vpop.f32.mrb[23].mxu0  ;;  %v1576_v61 = vadd.f32 %v1571_v57, %v1423_v44 }
 0xb04   : > { %v1579_v62 = vsel %vm682_vm1, %v1576_v61, 0.0 }
 0xb05   : > { %1580 = vadd.xlane.f32.xlu0 %v1579_v62 }
 0xb92   : > { %v1581_v63 = vpop.xlane.xlu0 %1580 }
 0xb93   : > { %v1582_v1 = vmul.f32 0.03125, %v1581_v63 }
 0xb95   : > { %v1583_v2 = vsub.f32 %v1576_v61, %v1582_v1 }
 0xb97   : > { %v1584_v4 = vmul.f32 %v1583_v2, %v1583_v2 }
 0xb99   : > { %v1585_v5 = vsel %vm682_vm1, %v1584_v4, 0.0 }
 0xb9a   : > { %1586 = vadd.xlane.f32.xlu0 %v1585_v5 }
 0xc27   : > { %v1587_v39 = vpop.xlane.xlu0 %1586 }
 0xc28   : > { %v1588_v6 = vmul.f32 0.03125, %v1587_v39 }
 0xc2a   : > { %v1589_v7 = vadd.f32 1e-05, %v1588_v6 }
 0xc2c   : > { %2057 = vrsqrt.f32 %v1589_v7 }
 0xc36   : > { %v2058_v8 = vpop.eup %2057 }
 0xc37   : > { %v1591_v10 = vmul.f32 %v2058_v8, %v1583_v2 }
 0xc39   : > { %v1598_v12 = vmul.f32 %v1794_v9, %v1591_v10 }
 0xc3b   : > { %v1605_v13 = vadd.f32 %v1795_v11, %v1598_v12 }
 0xc3d   : > { %1606 = vst.msk [vmem:[%s650_s22] sm:$0xff] %vm682_vm1, %v1605_v13 }
 0xc3e   : > { %2212 = shalt.err (!%p2209_p0)
}
 0xc3f   : > { %s2213_s1 = scalar_lea.hbm %s2745_s29, 128  ;;  %s2217_s17 = scalar_lea.hbm %s2860_s21, 256 }
 0xc40   : > { %p2214_p10 = scmp.ne.s32.totalorder %s2745_s29, %s2213_s1  ;;  %p2218_p4 = scmp.lt.u32.totalorder %s2745_s29, %s2860_s21 }
 0xc41   : > { %p2219_p12 = scmp.lt.u32.totalorder %s2217_s17, %s2213_s1  ;;  %p2221_p8 = scmp.lt.u32.totalorder %s2213_s1, %s2745_s29 }
 0xc42   : > { %p2215_p2 = pnand %p2214_p10, %p2861_p11 }
 0xc43   : > { %p2220_p7 = por %p2219_p12, %p2218_p4 }
 0xc44   : > { %p2216_p3 = pneg %p2215_p2 }
 0xc45   : > { %p2222_p13 = por %p2221_p8, %p2220_p7 }
 0xc47   : > { %p2223_p1 = pnand %p2222_p13, %p2216_p3 }
 0xc49   : > { %2226 = shalt.err (!%p2223_p1)
}
 0xc4a   : > { %1951 = dma.vmem_to_hbm [thread:$0]  (%p2861_p11), %s2747_s27, 128, %s2745_s29, %s1608_s18  }
 0xc4b PF: > { %s2862_s26 = sld [smem:[#allocation19_spill]]  ;;  %s2863_s16 = sld [smem:[#allocation16_spill]] }
 0xc4c   : > { %s2864_s24 = sld [smem:[#allocation23_spill]] }
 0xc51   : > { %p1983_p6 = scmp.ge.s32.totalorder %s2862_s26, 2  ;;  %s1633_s0 = sand.u32 1, %s2863_s16  }
 0xc52   : > { %p2865_p9 = scmp.ne.s32.totalorder %s2864_s24, 0  ;;  %s1634_s2 = scalar_lea.sflag [#allocation4], %s1633_s0 }
 0xc54   : > { %p1970_p5 = pnand %p1983_p6, %p2865_p9 }
 0xc56   : > { %2256 = dma.done.wait (!%p1970_p5), %s1634_s2, 128  }
 0xc57   : > { %2258 = vsyncadd (!%p1970_p5), %s1634_s2, 4294967168  ;;  %s2866_s30 = sld [smem:[#allocation20_spill]]  ;;  %s2867_s27 = sld [smem:[#allocation17_spill]] }
 0xc58   : > { %s2868_s28 = sld [smem:[#allocation18_spill]]  ;;  %s2869_s29 = sld [smem:[#allocation21_spill]] }
 0xc5d   : > { %p31_p0 = scmp.ge.s32.totalorder %s2866_s30, 4  }
 0xc5f   :  { %33 = sbr.rel (!%p31_p0) target bundleno = 13 (0xd), region = 151 }
 0xc66   :  { %1639 = vsyncpa [#allocation3], 1 }
 0xc67   :  { %1641 = vsyncpa [#allocation3 + $0x1], 1 }
 0xc68   :  { %1642 = vsyncpa [#allocation6], 1 }
 0xc69   :  { %1643 = vsyncpa [#allocation9], 1 }
 0xc6a   :  { %1644 = vsyncpa [#allocation4], 1 }
 0xc6b   :  { %1646 = vsyncpa [#allocation4 + $0x1], 1 }

</bundles_post_ra>
